<compile_context>
chip_gen: v7x
topology: tpu7x:2x2x1
jax: 0.10.0
libtpu: 0.0.40
codegen_flags: <defaults>
</compile_context>

<pallas_src>
import jax
import jax.numpy as jnp
from jax.experimental import pallas as pl
from jax.experimental.pallas import tpu as pltpu

EPS = 1e-5  # PyTorch BatchNorm default eps

# Row layout of the f32 "pack A" buffer (lane width 128):
#   rows  0:8    w1 zero-padded to K=8        (8, 128)
#   row   8      b1                           (1, 128)
#   row   9      b2                           (1, 128)
#   row  10      b6                           (1, 128)
#   row  11      b7 zero-padded to 128 lanes  (1, 128)
#   rows 16:144  w7 zero-padded to N=128      (128, 128)   (8-aligned start)
_PA_ROWS = 144
# Row layout of the f32 "pack B" buffer (lane width 256):
#   row 0        b3   (1, 256)
#   row 1        b5   (1, 256)
#   rows 2:2+NC  w5b  (NC, 256)


def _center_reg_kernel(x_ref, oh_ref, pa_ref, pb_ref,
                       w128_ref, w256_ref, out_ref):
    BM = x_ref.shape[0]          # B * m_points
    B = out_ref.shape[0]
    M = BM // B
    NC = oh_ref.shape[1]

    # ---- static views into the packed small-operand buffers ----
    w1 = pa_ref[0:8, :]                       # (8, 128)  K-padded
    b1 = pa_ref[8:9, :]
    b2 = pa_ref[9:10, :]
    b6 = pa_ref[10:11, :]
    b7 = pa_ref[11:12, :]
    w7 = pa_ref[16:144, :]                    # (128, 128) N-padded
    b3 = pb_ref[0:1, :]                       # (1, 256)
    b5 = pb_ref[1:2, :]                       # (1, 256)
    w5b = pb_ref[2:2 + NC, :]                 # (NC, 256)
    w2 = w128_ref[0:128, :]                   # (128, 128) bf16
    w6 = w128_ref[128:384, :]                 # (256, 128) bf16
    w3 = w256_ref[0:128, :]                   # (128, 256) bf16
    w5a = w256_ref[128:384, :]                # (256, 256) bf16

    # ---- layer 1: single MXU dot on the K-padded input (f32 acc) ----
    h = jnp.maximum(
        jnp.dot(x_ref[...], w1, preferred_element_type=jnp.float32) + b1,
        0.0).astype(jnp.bfloat16)             # (BM, 128) bf16

    # ---- layers 2/3: bf16 in / f32 acc, bf16 activation stores ----
    h = jnp.maximum(
        jnp.dot(h, w2, preferred_element_type=jnp.float32) + b2,
        0.0).astype(jnp.bfloat16)             # (BM, 128)
    h = jnp.maximum(
        jnp.dot(h, w3, preferred_element_type=jnp.float32) + b3,
        0.0).astype(jnp.bfloat16)             # (BM, 256)

    # ---- MaxPool2d((m_points, 1)): global max over the point axis ----
    pooled = jnp.max(h.reshape(B, M, h.shape[1]), axis=1)      # (B, 256) bf16

    # ---- one-hot branch folded in: ohb = one_hot @ w5b + b5 (VPU loop) ----
    oh = oh_ref[...]                                            # (B, NC) f32
    ohb = b5
    for c in range(NC):                                         # static, tiny
        ohb = ohb + oh[:, c:c + 1] * w5b[c:c + 1, :]            # (B, 256)

    # ---- center regressor ----
    f = jnp.maximum(
        jnp.dot(pooled, w5a, preferred_element_type=jnp.float32) + ohb,
        0.0).astype(jnp.bfloat16)             # (B, 256)
    f = jnp.maximum(
        jnp.dot(f, w6, preferred_element_type=jnp.float32) + b6,
        0.0)                                  # (B, 128) f32
    # lane-dense padded output; wrapper slices [:, :3]
    out_ref[...] = jnp.dot(f, w7, preferred_element_type=jnp.float32) + b7


def center_regression_forward(x, one_hot, packed):
    """x: (B, m_points, n_channels) f32; one_hot: (B, n_classes) f32."""
    B, M, C = x.shape
    assert C <= 8, "layer-1 K padding assumes n_channels <= 8"
    pack_a, pack_b, w128, w256 = packed

    # Zero-pad the point features to K=8 so layer 1 is one clean MXU dot.
    x_pad = jnp.pad(x.reshape(B * M, C), ((0, 0), (0, 8 - C)))

    args = (x_pad, one_hot, pack_a, pack_b, w128, w256)

    def full(a):
        n = a.ndim
        return pl.BlockSpec(a.shape, lambda i, _n=n: (0,) * _n)

    flops = (2 * B * M * (8 * 128 + 128 * 128 + 128 * 256)
             + 2 * B * (256 * 256 + 256 * 128 + 128 * 128))
    bytes_accessed = (sum(int(a.size) * a.dtype.itemsize for a in args)
                      + B * 128 * 4)

    out = pl.pallas_call(
        _center_reg_kernel,
        grid=(1,),
        in_specs=[full(a) for a in args],
        out_specs=pl.BlockSpec((B, 128), lambda i: (0, 0)),
        out_shape=jax.ShapeDtypeStruct((B, 128), jnp.float32),
        compiler_params=pltpu.CompilerParams(
            dimension_semantics=("arbitrary",)),
        cost_estimate=pl.CostEstimate(flops=flops, transcendentals=0,
                                      bytes_accessed=bytes_accessed),
    )(*args)
    return out[:, :3]


# ---------------- parameter setup (glue, deterministic) ----------------

def _fold_bn(w, b, gamma, beta, mean, var):
    scale = gamma / jnp.sqrt(var + EPS)
    return w * scale[None, :], (b - mean) * scale + beta


def _make_layer(key, fan_in, fan_out, bn=True):
    kw, kb, kg, kbt, km, kv = jax.random.split(key, 6)
    bound = 1.0 / jnp.sqrt(fan_in)
    w = jax.random.uniform(kw, (fan_in, fan_out), jnp.float32, -bound, bound)
    b = jax.random.uniform(kb, (fan_out,), jnp.float32, -bound, bound)
    if bn:
        gamma = 1.0 + 0.1 * jax.random.normal(kg, (fan_out,), jnp.float32)
        beta = 0.1 * jax.random.normal(kbt, (fan_out,), jnp.float32)
        mean = 0.1 * jax.random.normal(km, (fan_out,), jnp.float32)
        var = jnp.abs(1.0 + 0.1 * jax.random.normal(kv, (fan_out,), jnp.float32))
        w, b = _fold_bn(w, b, gamma, beta, mean, var)
    return w, b.reshape(1, fan_out)


def make_params(key, n_channels, n_classes):
    k1, k2, k3, k5, k6, k7 = jax.random.split(key, 6)
    w1, b1 = _make_layer(k1, n_channels, 128, bn=True)
    w2, b2 = _make_layer(k2, 128, 128, bn=True)
    w3, b3 = _make_layer(k3, 128, 256, bn=True)
    w5, b5 = _make_layer(k5, 256 + n_classes, 256, bn=True)
    w5a, w5b = w5[:256], w5[256:]
    w6, b6 = _make_layer(k6, 256, 128, bn=True)
    w7, b7 = _make_layer(k7, 128, 3, bn=False)   # fc7: no BN, no activation
    # Large weights live in bf16 (the kernel accumulates in f32); the
    # reference uses the exact same (already-quantized) values.
    w2, w3, w5a, w6 = (a.astype(jnp.bfloat16) for a in (w2, w3, w5a, w6))
    return (w1, b1, w2, b2, w3, b3, w5a, w5b, b5, w6, b6, w7, b7)


def pack_params(params):
    """Built once: pack small operands lane-dense and the big weights."""
    (w1, b1, w2, b2, w3, b3, w5a, w5b, b5, w6, b6, w7, b7) = params
    C = w1.shape[0]
    NC = w5b.shape[0]
    assert C <= 8 and 2 + NC <= 8

    pack_a = jnp.zeros((_PA_ROWS, 128), jnp.float32)
    pack_a = pack_a.at[0:C, :].set(w1)                 # K-padded w1
    pack_a = pack_a.at[8:9, :].set(b1)
    pack_a = pack_a.at[9:10, :].set(b2)
    pack_a = pack_a.at[10:11, :].set(b6)
    pack_a = pack_a.at[11:12, :3].set(b7)              # N-padded b7
    pack_a = pack_a.at[16:144, :3].set(w7)             # N-padded w7

    pack_b = jnp.zeros((8, 256), jnp.float32)
    pack_b = pack_b.at[0:1, :].set(b3)
    pack_b = pack_b.at[1:2, :].set(b5)
    pack_b = pack_b.at[2:2 + NC, :].set(w5b)

    w128 = jnp.concatenate([w2, w6], axis=0)           # (384, 128) bf16
    w256 = jnp.concatenate([w3, w5a], axis=0)          # (384, 256) bf16
    return (pack_a, pack_b, w128, w256)


def _reference(x, one_hot, params):
    (w1, b1, w2, b2, w3, b3, w5a, w5b, b5, w6, b6, w7, b7) = params
    dot = lambda a, b: jnp.dot(a, b.astype(jnp.float32), precision="highest")
    h = jnp.maximum(dot(x, w1) + b1, 0.0)
    h = jnp.maximum(dot(h, w2) + b2, 0.0)
    h = jnp.maximum(dot(h, w3) + b3, 0.0)        # (B, M, 256)
    pooled = jnp.max(h, axis=1)                  # (B, 256)
    f = jnp.maximum(dot(pooled, w5a) + dot(one_hot, w5b) + b5, 0.0)
    f = jnp.maximum(dot(f, w6) + b6, 0.0)
    return dot(f, w7) + b7


if __name__ == "__main__":
    B, M, C, NC = 2, 128, 4, 3          # batch, m_points, n_channels, n_classes
    key = jax.random.PRNGKey(0)
    kx, koh, kp = jax.random.split(key, 3)

    x = jax.random.normal(kx, (B, M, C), jnp.float32)      # (B, m_points, channels)
    cls = jax.random.randint(koh, (B,), 0, NC)
    one_hot = jax.nn.one_hot(cls, NC, dtype=jnp.float32)   # (B, n_classes)

    params = make_params(kp, C, NC)
    packed = pack_params(params)                            # built once

    out = center_regression_forward(x, one_hot, packed)
    out = jax.block_until_ready(out)

    ref = _reference(x, one_hot, params)
    assert out.shape == (B, 3)
    assert jnp.allclose(out, ref, rtol=1e-2, atol=1e-2), (out, ref)

    print("KERNEL_OK")
</pallas_src>

<mosaic_0001>
module attributes {stable_mosaic.version = 11 : i64} {
  func.func @_center_reg_kernel(%arg0: i32, %arg1: memref<256x8xf32, #tpu.memory_space<vmem>>, %arg2: memref<2x3xf32, #tpu.memory_space<vmem>>, %arg3: memref<144x128xf32, #tpu.memory_space<vmem>>, %arg4: memref<8x256xf32, #tpu.memory_space<vmem>>, %arg5: memref<384x128xbf16, #tpu.memory_space<vmem>>, %arg6: memref<384x256xbf16, #tpu.memory_space<vmem>>, %arg7: memref<2x128xf32, #tpu.memory_space<vmem>>) attributes {dimension_semantics = [#tpu.dimension_semantics<arbitrary>], iteration_bounds = array<i64: 1>, scalar_prefetch = 0 : i64, scratch_operands = 0 : i64, tpu.core_type = #tpu.core_type<tc>, window_params = [{pipeline_mode = #tpu.pipeline_mode<synchronous>, transform_indices = @transform_0, window_bounds = array<i64: 256, 8>}, {pipeline_mode = #tpu.pipeline_mode<synchronous>, transform_indices = @transform_1, window_bounds = array<i64: 2, 3>}, {pipeline_mode = #tpu.pipeline_mode<synchronous>, transform_indices = @transform_2, window_bounds = array<i64: 144, 128>}, {pipeline_mode = #tpu.pipeline_mode<synchronous>, transform_indices = @transform_3, window_bounds = array<i64: 8, 256>}, {pipeline_mode = #tpu.pipeline_mode<synchronous>, transform_indices = @transform_4, window_bounds = array<i64: 384, 128>}, {pipeline_mode = #tpu.pipeline_mode<synchronous>, transform_indices = @transform_5, window_bounds = array<i64: 384, 256>}, {pipeline_mode = #tpu.pipeline_mode<synchronous>, transform_indices = @transform_6, window_bounds = array<i64: 2, 128>}]} {
    %c0 = arith.constant 0 : index
    %c0_0 = arith.constant 0 : index
    %0 = vector.load %arg3[%c0, %c0_0] : memref<144x128xf32, #tpu.memory_space<vmem>>, vector<8x128xf32>
    %c8 = arith.constant 8 : index
    %c0_1 = arith.constant 0 : index
    %1 = vector.load %arg3[%c8, %c0_1] : memref<144x128xf32, #tpu.memory_space<vmem>>, vector<1x128xf32>
    %c9 = arith.constant 9 : index
    %c0_2 = arith.constant 0 : index
    %2 = vector.load %arg3[%c9, %c0_2] : memref<144x128xf32, #tpu.memory_space<vmem>>, vector<1x128xf32>
    %c10 = arith.constant 10 : index
    %c0_3 = arith.constant 0 : index
    %3 = vector.load %arg3[%c10, %c0_3] : memref<144x128xf32, #tpu.memory_space<vmem>>, vector<1x128xf32>
    %c11 = arith.constant 11 : index
    %c0_4 = arith.constant 0 : index
    %4 = vector.load %arg3[%c11, %c0_4] : memref<144x128xf32, #tpu.memory_space<vmem>>, vector<1x128xf32>
    %c16 = arith.constant 16 : index
    %c0_5 = arith.constant 0 : index
    %5 = vector.load %arg3[%c16, %c0_5] : memref<144x128xf32, #tpu.memory_space<vmem>>, vector<128x128xf32>
    %c0_6 = arith.constant 0 : index
    %c0_7 = arith.constant 0 : index
    %6 = vector.load %arg4[%c0_6, %c0_7] : memref<8x256xf32, #tpu.memory_space<vmem>>, vector<1x256xf32>
    %c1 = arith.constant 1 : index
    %c0_8 = arith.constant 0 : index
    %7 = vector.load %arg4[%c1, %c0_8] : memref<8x256xf32, #tpu.memory_space<vmem>>, vector<1x256xf32>
    %c2 = arith.constant 2 : index
    %c0_9 = arith.constant 0 : index
    %8 = vector.load %arg4[%c2, %c0_9] : memref<8x256xf32, #tpu.memory_space<vmem>>, vector<3x256xf32>
    %c0_10 = arith.constant 0 : index
    %c0_11 = arith.constant 0 : index
    %9 = vector.load %arg5[%c0_10, %c0_11] : memref<384x128xbf16, #tpu.memory_space<vmem>>, vector<128x128xbf16>
    %c128 = arith.constant 128 : index
    %c0_12 = arith.constant 0 : index
    %10 = vector.load %arg5[%c128, %c0_12] : memref<384x128xbf16, #tpu.memory_space<vmem>>, vector<256x128xbf16>
    %c0_13 = arith.constant 0 : index
    %c0_14 = arith.constant 0 : index
    %11 = vector.load %arg6[%c0_13, %c0_14] : memref<384x256xbf16, #tpu.memory_space<vmem>>, vector<128x256xbf16>
    %c128_15 = arith.constant 128 : index
    %c0_16 = arith.constant 0 : index
    %12 = vector.load %arg6[%c128_15, %c0_16] : memref<384x256xbf16, #tpu.memory_space<vmem>>, vector<256x256xbf16>
    %c0_17 = arith.constant 0 : index
    %c0_18 = arith.constant 0 : index
    %13 = vector.load %arg1[%c0_17, %c0_18] : memref<256x8xf32, #tpu.memory_space<vmem>>, vector<256x8xf32>
    %cst = arith.constant dense<0.000000e+00> : vector<256x128xf32>
    %14 = tpu.matmul %13, %0, %cst {dimension_numbers = #tpu.dot_dimension_numbers<[1], [0], [0], [1], [0, 0, 1, 1], [], []>} : vector<256x8xf32>, vector<8x128xf32>, vector<256x128xf32> -> vector<256x128xf32>
    %15 = vector.broadcast %1 : vector<1x128xf32> to vector<256x128xf32>
    %16 = arith.addf %14, %15 : vector<256x128xf32>
    %cst_19 = arith.constant 0.000000e+00 : f32
    %17 = vector.broadcast %cst_19 : f32 to vector<256x128xf32>
    %18 = arith.maximumf %16, %17 : vector<256x128xf32>
    %19 = arith.truncf %18 : vector<256x128xf32> to vector<256x128xbf16>
    %cst_20 = arith.constant dense<0.000000e+00> : vector<256x128xf32>
    %20 = tpu.matmul %19, %9, %cst_20 {dimension_numbers = #tpu.dot_dimension_numbers<[1], [0], [0], [1], [0, 0, 1, 1], [], []>} : vector<256x128xbf16>, vector<128x128xbf16>, vector<256x128xf32> -> vector<256x128xf32>
    %21 = vector.broadcast %2 : vector<1x128xf32> to vector<256x128xf32>
    %22 = arith.addf %20, %21 : vector<256x128xf32>
    %cst_21 = arith.constant 0.000000e+00 : f32
    %23 = vector.broadcast %cst_21 : f32 to vector<256x128xf32>
    %24 = arith.maximumf %22, %23 : vector<256x128xf32>
    %25 = arith.truncf %24 : vector<256x128xf32> to vector<256x128xbf16>
    %cst_22 = arith.constant dense<0.000000e+00> : vector<256x256xf32>
    %26 = tpu.matmul %25, %11, %cst_22 {dimension_numbers = #tpu.dot_dimension_numbers<[1], [0], [0], [1], [0, 0, 1, 1], [], []>} : vector<256x128xbf16>, vector<128x256xbf16>, vector<256x256xf32> -> vector<256x256xf32>
    %27 = vector.broadcast %6 : vector<1x256xf32> to vector<256x256xf32>
    %28 = arith.addf %26, %27 : vector<256x256xf32>
    %cst_23 = arith.constant 0.000000e+00 : f32
    %29 = vector.broadcast %cst_23 : f32 to vector<256x256xf32>
    %30 = arith.maximumf %28, %29 : vector<256x256xf32>
    %31 = arith.truncf %30 : vector<256x256xf32> to vector<256x256xbf16>
    %32 = vector.shape_cast %31 : vector<256x256xbf16> to vector<2x128x256xbf16>
    %cst_24 = arith.constant dense<0xFF80> : vector<2x256xbf16>
    %33 = vector.multi_reduction <maximumf>, %32, %cst_24 [1] : vector<2x128x256xbf16> to vector<2x256xbf16>
    %c0_25 = arith.constant 0 : index
    %c0_26 = arith.constant 0 : index
    %34 = vector.load %arg2[%c0_25, %c0_26] : memref<2x3xf32, #tpu.memory_space<vmem>>, vector<2x3xf32>
    %35 = vector.extract_strided_slice %34 {offsets = [0, 0], sizes = [2, 1], strides = [1, 1]} : vector<2x3xf32> to vector<2x1xf32>
    %36 = vector.extract_strided_slice %8 {offsets = [0, 0], sizes = [1, 256], strides = [1, 1]} : vector<3x256xf32> to vector<1x256xf32>
    %37 = vector.broadcast %35 : vector<2x1xf32> to vector<2x256xf32>
    %38 = vector.broadcast %36 : vector<1x256xf32> to vector<2x256xf32>
    %39 = arith.mulf %37, %38 : vector<2x256xf32>
    %40 = vector.broadcast %7 : vector<1x256xf32> to vector<2x256xf32>
    %41 = arith.addf %40, %39 : vector<2x256xf32>
    %42 = vector.extract_strided_slice %34 {offsets = [0, 1], sizes = [2, 1], strides = [1, 1]} : vector<2x3xf32> to vector<2x1xf32>
    %43 = vector.extract_strided_slice %8 {offsets = [1, 0], sizes = [1, 256], strides = [1, 1]} : vector<3x256xf32> to vector<1x256xf32>
    %44 = vector.broadcast %42 : vector<2x1xf32> to vector<2x256xf32>
    %45 = vector.broadcast %43 : vector<1x256xf32> to vector<2x256xf32>
    %46 = arith.mulf %44, %45 : vector<2x256xf32>
    %47 = arith.addf %41, %46 : vector<2x256xf32>
    %48 = vector.extract_strided_slice %34 {offsets = [0, 2], sizes = [2, 1], strides = [1, 1]} : vector<2x3xf32> to vector<2x1xf32>
    %49 = vector.extract_strided_slice %8 {offsets = [2, 0], sizes = [1, 256], strides = [1, 1]} : vector<3x256xf32> to vector<1x256xf32>
    %50 = vector.broadcast %48 : vector<2x1xf32> to vector<2x256xf32>
    %51 = vector.broadcast %49 : vector<1x256xf32> to vector<2x256xf32>
    %52 = arith.mulf %50, %51 : vector<2x256xf32>
    %53 = arith.addf %47, %52 : vector<2x256xf32>
    %cst_27 = arith.constant dense<0.000000e+00> : vector<2x256xf32>
    %54 = tpu.matmul %33, %12, %cst_27 {dimension_numbers = #tpu.dot_dimension_numbers<[1], [0], [0], [1], [0, 0, 1, 1], [], []>} : vector<2x256xbf16>, vector<256x256xbf16>, vector<2x256xf32> -> vector<2x256xf32>
    %55 = arith.addf %54, %53 : vector<2x256xf32>
    %cst_28 = arith.constant 0.000000e+00 : f32
    %56 = vector.broadcast %cst_28 : f32 to vector<2x256xf32>
    %57 = arith.maximumf %55, %56 : vector<2x256xf32>
    %58 = arith.truncf %57 : vector<2x256xf32> to vector<2x256xbf16>
    %cst_29 = arith.constant dense<0.000000e+00> : vector<2x128xf32>
    %59 = tpu.matmul %58, %10, %cst_29 {dimension_numbers = #tpu.dot_dimension_numbers<[1], [0], [0], [1], [0, 0, 1, 1], [], []>} : vector<2x256xbf16>, vector<256x128xbf16>, vector<2x128xf32> -> vector<2x128xf32>
    %60 = vector.broadcast %3 : vector<1x128xf32> to vector<2x128xf32>
    %61 = arith.addf %59, %60 : vector<2x128xf32>
    %cst_30 = arith.constant 0.000000e+00 : f32
    %62 = vector.broadcast %cst_30 : f32 to vector<2x128xf32>
    %63 = arith.maximumf %61, %62 : vector<2x128xf32>
    %cst_31 = arith.constant dense<0.000000e+00> : vector<2x128xf32>
    %64 = tpu.matmul %63, %5, %cst_31 {dimension_numbers = #tpu.dot_dimension_numbers<[1], [0], [0], [1], [0, 0, 1, 1], [], []>} : vector<2x128xf32>, vector<128x128xf32>, vector<2x128xf32> -> vector<2x128xf32>
    %65 = vector.broadcast %4 : vector<1x128xf32> to vector<2x128xf32>
    %66 = arith.addf %64, %65 : vector<2x128xf32>
    %c0_32 = arith.constant 0 : index
    %c0_33 = arith.constant 0 : index
    %67 = vector.load %arg7[%c0_32, %c0_33] : memref<2x128xf32, #tpu.memory_space<vmem>>, vector<2x128xf32>
    tpu.vector_store %arg7[%c0_32, %c0_33], %66 {strides = array<i32>} : memref<2x128xf32, #tpu.memory_space<vmem>>, vector<2x128xf32>,
    return
  }
  func.func @transform_0(%arg0: i32) -> (i32, i32) {
    %c0_i32 = arith.constant 0 : i32
    %c0_i32_0 = arith.constant 0 : i32
    %c0_i32_1 = arith.constant 0 : i32
    return %c0_i32, %c0_i32_0 : i32, i32
  }
  func.func @transform_1(%arg0: i32) -> (i32, i32) {
    %c0_i32 = arith.constant 0 : i32
    %c0_i32_0 = arith.constant 0 : i32
    %c0_i32_1 = arith.constant 0 : i32
    return %c0_i32, %c0_i32_0 : i32, i32
  }
  func.func @transform_2(%arg0: i32) -> (i32, i32) {
    %c0_i32 = arith.constant 0 : i32
    %c0_i32_0 = arith.constant 0 : i32
    %c0_i32_1 = arith.constant 0 : i32
    return %c0_i32, %c0_i32_0 : i32, i32
  }
  func.func @transform_3(%arg0: i32) -> (i32, i32) {
    %c0_i32 = arith.constant 0 : i32
    %c0_i32_0 = arith.constant 0 : i32
    %c0_i32_1 = arith.constant 0 : i32
    return %c0_i32, %c0_i32_0 : i32, i32
  }
  func.func @transform_4(%arg0: i32) -> (i32, i32) {
    %c0_i32 = arith.constant 0 : i32
    %c0_i32_0 = arith.constant 0 : i32
    %c0_i32_1 = arith.constant 0 : i32
    return %c0_i32, %c0_i32_0 : i32, i32
  }
  func.func @transform_5(%arg0: i32) -> (i32, i32) {
    %c0_i32 = arith.constant 0 : i32
    %c0_i32_0 = arith.constant 0 : i32
    %c0_i32_1 = arith.constant 0 : i32
    return %c0_i32, %c0_i32_0 : i32, i32
  }
  func.func @transform_6(%arg0: i32) -> (i32, i32) {
    %c0_i32 = arith.constant 0 : i32
    %c0_i32_0 = arith.constant 0 : i32
    %c0_i32_1 = arith.constant 0 : i32
    return %c0_i32, %c0_i32_0 : i32, i32
  }
}

</mosaic_0001>

<bundles_post_ra>
// kernel: tpu_custom_call.1
= control target key start
LH: loop header
LB: loop body
LE: loop exit
PB: predicated region body
PF: predicated region fallthrough
CT: control target
= control target key end

     0   :  { %11 = vsyncpa [#allocation3], 0  ;;  %s2843_s0 = inlined_call_operand.vmem [shape: f32[256,8], index: 0, kind: input, shape index: {}]   ;;  %s2844_s1 = inlined_call_operand.vmem [shape: f32[2,3], index: 1, kind: input, shape index: {}]   ;;  %s2845_s2 = inlined_call_operand.hbm [shape: f32[144,128], index: 2, kind: input, shape index: {}]   ;;  %s2846_s3 = inlined_call_operand.vmem [shape: f32[8,256], index: 3, kind: input, shape index: {}]   ;;  %s2847_s4 = inlined_call_operand.vmem [shape: bf16[384,128], index: 4, kind: input, shape index: {}]   ;;  %s2848_s5 = inlined_call_operand.hbm [shape: bf16[384,256], index: 5, kind: input, shape index: {}]   ;;  %s2849_s6 = inlined_call_operand.hbm [shape: f32[2,128], index: 6, kind: output, shape index: {}]  }
   0x1   :  { %12 = vsyncpa [#allocation6], 0 }
   0x2   :  { %13 = vsyncpa [#allocation4], 0  ;;  %s2350_s21 = smov [#allocation2]   ;;  %s2278_s25 = scalar_lea.hbm %s2845_s2, 2304 }
   0x3   :  { %s23_s22 = sshll.u32 %s2350_s21, 4  ;;  %p2279_p0 = scmp.ne.s32.totalorder %s2845_s2, %s2278_s25  ;;  %s24_s22 = int_to_ptr.vmem [resolvable:$true] %s23_s22 }
   0x4   :  { %p2282_p1 = scmp.lt.u32.totalorder %s2278_s25, %s2845_s2 }
   0x6   :  { %p2284_p2 = pnand %p2282_p1, %p2279_p0 }
   0x8   :  { %2287 = shalt.err (!%p2284_p2)
}
   0x9   :  { %s2288_s30 = scalar_lea.vmem %s24_s22, 2304  ;;  %p2293_p4 = scmp.lt.s32.totalorder %s24_s22, %s24_s22 }
   0xa   :  { %p2289_p3 = scmp.ne.s32.totalorder %s24_s22, %s2288_s30  ;;  %p2294_p5 = scmp.lt.s32.totalorder %s2288_s30, %s2288_s30 }
   0xc   :  { %p2295_p6 = por %p2294_p5, %p2293_p4 }
   0xe   :  { %p2296_p7 = pnand %p2295_p6, %p2289_p3 }
  0x10   :  { %2299 = shalt.err (!%p2296_p7)
}
  0x11   :  { %s2351_s7 = smov 128   ;;  %s2352_s8 = smov 8  }
  0x12   :  { %29 = dma.hbm_to_vmem [thread:$0]  %s2845_s2, 2304, %s24_s22, [#allocation3], %s2351_s7, %s2351_s7, %s2352_s8  }
  0x13   :  { %s2353_s11 = smov [#allocation5]   ;;  %s2300_s15 = scalar_lea.hbm %s2848_s5, 6144 }
  0x14   :  { %s39_s12 = sshll.u32 %s2353_s11, 4  ;;  %p2301_p8 = scmp.ne.s32.totalorder %s2848_s5, %s2300_s15  ;;  %s40_s12 = int_to_ptr.vmem [resolvable:$true] %s39_s12 }
  0x15   :  { %p2304_p9 = scmp.lt.u32.totalorder %s2300_s15, %s2848_s5 }
  0x17   :  { %p2306_p10 = pnand %p2304_p9, %p2301_p8 }
  0x19   :  { %2309 = shalt.err (!%p2306_p10)
}
  0x1a   :  { %s2310_s20 = scalar_lea.vmem %s40_s12, 6144  ;;  %p2315_p12 = scmp.lt.s32.totalorder %s40_s12, %s40_s12 }
  0x1b   :  { %p2311_p11 = scmp.ne.s32.totalorder %s40_s12, %s2310_s20  ;;  %p2316_p13 = scmp.lt.s32.totalorder %s2310_s20, %s2310_s20 }
  0x1d   :  { %p2317_p0 = por %p2316_p13, %p2315_p12 }
  0x1f   :  { %p2318_p1 = pnand %p2317_p0, %p2311_p11 }
  0x21   :  { %2321 = shalt.err (!%p2318_p1)
}
  0x22   :  { %45 = dma.hbm_to_vmem [thread:$0]  %s2848_s5, 6144, %s40_s12, [#allocation6], %s2351_s7, %s2351_s7, %s2352_s8  }
  0x23   :  { %2344 = dma.done.wait [#allocation3], 2304  }
  0x24   :  { %2345 = vsyncadd [#allocation3], 4294964992 }
  0x25   :  { %2346 = dma.done.wait [#allocation6], 6144  }
  0x26   :  { %2347 = vsyncadd [#allocation6], 4294961152  ;;  %vm211_vm0 = vcmask 64512   ;;  %v53_v0 = vld [vmem:[#allocation2] sm:$0xff]  ;;  %v176_v2 = vld [vmem:[%s2843_s0 + $0x8] sm:$0xff]  ;;  %vm1359_vm1 = vcmask 1041409  }
  0x27   :  { %v175_v1 = vld [vmem:[%s2843_s0] sm:$0xff]  ;;  %2008 = vmatprep.subr.mxu0 %v53_v0  ;;  %v177_v3 = vld [vmem:[%s2843_s0 + $0x10] sm:$0xff]  ;;  %2165 = vmatprep.subr.mxu1 %v53_v0  ;;  %v178_v4 = vld [vmem:[%s2843_s0 + $0x18] sm:$0xff]  ;;  %vm2358_vm2 = vmmov 0  }
  0x28   :  { %2010 = vmatprep.mubr.msk.f32.mxu0 %vm211_vm0, %v175_v1  ;;  %2009 = vmatpush3.msra.mxu0 %v53_v0  ;;  %v179_v5 = vld [vmem:[%s2843_s0 + $0x20] sm:$0xff]  ;;  %v192_v7 = vld [vmem:[%s2843_s0 + $0x88] sm:$0xff]  ;;  %v193_v8 = vld [vmem:[%s2843_s0 + $0x90] sm:$0xff] }
  0x29   :  { %2011 = vmatmul.mubr.msk.f32.vlgmr.msra.gmra.mrb[0].mxu0 %vm211_vm0, %v176_v2  ;;  %2166 = vmatpush3.msra.mxu1 %v53_v0  ;;  %v191_v6 = vld [vmem:[%s2843_s0 + $0x80] sm:$0xff]  ;;  %v180_v9 = vld [vmem:[%s2843_s0 + $0x28] sm:$0xff]  ;;  %v194_v10 = vld [vmem:[%s2843_s0 + $0x98] sm:$0xff] }
  0x2a   :  { %2013 = vmatprep.mubr.msk.f32.mxu0 %vm211_vm0, %v177_v3  ;;  %2034 = vmatprep.mubr.msk.f32.mxu1 %vm211_vm0, %v191_v6  ;;  %v181_v11 = vld [vmem:[%s2843_s0 + $0x30] sm:$0xff]  ;;  %v195_v12 = vld [vmem:[%s2843_s0 + $0xa0] sm:$0xff]  ;;  %v182_v13 = vld [vmem:[%s2843_s0 + $0x38] sm:$0xff] }
  0x2b   :  { %2035 = vmatmul.mubr.msk.f32.vlgmr.msra.gmra.mrb[0].mxu1 %vm211_vm0, %v192_v7  ;;  %v196_v14 = vld [vmem:[%s2843_s0 + $0xa8] sm:$0xff]  ;;  %v183_v15 = vld [vmem:[%s2843_s0 + $0x40] sm:$0xff]  ;;  %v197_v17 = vld [vmem:[%s2843_s0 + $0xb0] sm:$0xff] }
  0x2c   :  { %2037 = vmatprep.mubr.msk.f32.mxu1 %vm211_vm0, %v193_v8  ;;  %v2182_v16 = vld [vmem:[%s2847_s4] sm:$0xff]   ;;  %v2183_v18 = vld [vmem:[%s2847_s4 + $0x8] sm:$0xff]   ;;  %v198_v20 = vld [vmem:[%s2843_s0 + $0xb8] sm:$0xff] }
  0x2d   :  { %2014 = vmatmul.mubr.msk.f32.gmra.mrb[2].mxu0 %vm211_vm0, %v178_v4  ;;  %2058 = vmatprep.subr.bf16.mxu1 %v2182_v16  ;;  %v184_v19 = vld [vmem:[%s2843_s0 + $0x48] sm:$0xff]  ;;  %v185_v21 = vld [vmem:[%s2843_s0 + $0x50] sm:$0xff]  ;;  %v199_v22 = vld [vmem:[%s2843_s0 + $0xc0] sm:$0xff] }
  0x2e   :  { %2016 = vmatprep.mubr.msk.f32.mxu0 %vm211_vm0, %v179_v5  ;;  %2059 = vmatpush3.bf16.msra.mxu1 %v2182_v16  ;;  %v2184_v23 = vld [vmem:[%s2847_s4 + $0x10] sm:$0xff]   ;;  %v186_v24 = vld [vmem:[%s2843_s0 + $0x58] sm:$0xff]  ;;  %v200_v25 = vld [vmem:[%s2843_s0 + $0xc8] sm:$0xff] }
  0x2f   :  { %2038 = vmatmul.mubr.msk.f32.gmra.mrb[2].mxu1 %vm211_vm0, %v194_v10  ;;  %2060 = vmatprep.subr.bf16.mxu1 %v2183_v18  ;;  %v187_v26 = vld [vmem:[%s2843_s0 + $0x60] sm:$0xff]  ;;  %v201_v27 = vld [vmem:[%s2843_s0 + $0xd0] sm:$0xff]  ;;  %v2185_v28 = vld [vmem:[%s2847_s4 + $0x18] sm:$0xff]  }
  0x30   :  { %2040 = vmatprep.mubr.msk.f32.mxu1 %vm211_vm0, %v195_v12  ;;  %v188_v29 = vld [vmem:[%s2843_s0 + $0x68] sm:$0xff]  ;;  %v202_v30 = vld [vmem:[%s2843_s0 + $0xd8] sm:$0xff]  ;;  %v189_v31 = vld [vmem:[%s2843_s0 + $0x70] sm:$0xff] }
  0x31   :  { %2017 = vmatmul.mubr.msk.f32.gmra.mrb[4].mxu0 %vm211_vm0, %v180_v9  ;;  %v203_v32 = vld [vmem:[%s2843_s0 + $0xe0] sm:$0xff]  ;;  %v190_v34 = vld [vmem:[%s2843_s0 + $0x78] sm:$0xff]  ;;  %v204_v35 = vld [vmem:[%s2843_s0 + $0xe8] sm:$0xff] }
  0x32   :  { %2019 = vmatprep.mubr.msk.f32.mxu0 %vm211_vm0, %v181_v11  ;;  %2061 = vmatpush3.bf16.msra.mxu1 %v2183_v18  ;;  %v2186_v33 = vld [vmem:[%s2847_s4 + $0x20] sm:$0xff]   ;;  %v2187_v36 = vld [vmem:[%s2847_s4 + $0x28] sm:$0xff]   ;;  %v205_v37 = vld [vmem:[%s2843_s0 + $0xf0] sm:$0xff] }
  0x33   :  { %2041 = vmatmul.mubr.msk.f32.gmra.mrb[4].mxu1 %vm211_vm0, %v196_v14  ;;  %2062 = vmatprep.subr.bf16.mxu1 %v2184_v23  ;;  %v206_v38 = vld [vmem:[%s2843_s0 + $0xf8] sm:$0xff]  ;;  %v2188_v39 = vld [vmem:[%s2847_s4 + $0x30] sm:$0xff]   ;;  %v2195_v43 = vld [vmem:[#allocation5 + $0x14] ss:$8 sps:$4 sm:$0xff]  }
  0x34   :  { %2043 = vmatprep.mubr.msk.f32.mxu1 %vm211_vm0, %v197_v17  ;;  %v2189_v40 = vld [vmem:[%s2847_s4 + $0x38] sm:$0xff]   ;;  %v2193_v44 = vld [vmem:[#allocation5 + $0x10] ss:$8 sps:$4 sm:$0xff]   ;;  %v2201_v47 = vld [vmem:[#allocation5 + $0x34] ss:$8 sps:$4 sm:$0xff]  }
  0x35   :  { %2020 = vmatmul.mubr.msk.f32.gmra.mrb[6].mxu0 %vm211_vm0, %v182_v13  ;;  %v2190_v41 = vld [vmem:[#allocation5] ss:$8 sps:$4 sm:$0xff]   ;;  %v2192_v42 = vld [vmem:[#allocation5 + $0x4] ss:$8 sps:$4 sm:$0xff]   ;;  %v2199_v48 = vld [vmem:[#allocation5 + $0x30] ss:$8 sps:$4 sm:$0xff]  }
  0x36   :  { %2022 = vmatprep.mubr.msk.f32.mxu0 %vm211_vm0, %v183_v15  ;;  %2063 = vmatpush3.bf16.msra.mxu1 %v2184_v23  ;;  %v2198_v45 = vld [vmem:[#allocation5 + $0x24] ss:$8 sps:$4 sm:$0xff]   ;;  %v2196_v46 = vld [vmem:[#allocation5 + $0x20] ss:$8 sps:$4 sm:$0xff]   ;;  %v2207_v51 = vld [vmem:[#allocation5 + $0x54] ss:$8 sps:$4 sm:$0xff]  }
  0x37   :  { %2044 = vmatmul.mubr.msk.f32.gmra.mrb[6].mxu1 %vm211_vm0, %v198_v20  ;;  %2064 = vmatprep.subr.bf16.mxu1 %v2185_v28  ;;  %v2204_v49 = vld [vmem:[#allocation5 + $0x44] ss:$8 sps:$4 sm:$0xff]   ;;  %v2202_v50 = vld [vmem:[#allocation5 + $0x40] ss:$8 sps:$4 sm:$0xff]   ;;  %v2205_v52 = vld [vmem:[#allocation5 + $0x50] ss:$8 sps:$4 sm:$0xff]  }
  0x38   :  { %2046 = vmatprep.mubr.msk.f32.mxu1 %vm211_vm0, %v199_v22  ;;  %933 = vmatprep.subr.bf16.mxu0 %v2192_v42  ;;  %v2572_v53 = vld [vmem:[#allocation2 + $0x8] ss:$0 sm:$0xff] }
  0x39   :  { %2023 = vmatmul.mubr.msk.f32.gmra.mrb[8].mxu0 %vm211_vm0, %v184_v19 }
  0x3a   :  { %2025 = vmatprep.mubr.msk.f32.mxu0 %vm211_vm0, %v185_v21  ;;  %2065 = vmatpush3.bf16.msra.mxu1 %v2185_v28 }
  0x3b   :  { %2047 = vmatmul.mubr.msk.f32.gmra.mrb[8].mxu1 %vm211_vm0, %v200_v25  ;;  %2066 = vmatprep.subr.bf16.mxu1 %v2186_v33 }
  0x3c   :  { %2049 = vmatprep.mubr.msk.f32.mxu1 %vm211_vm0, %v201_v27  ;;  %934 = vmatpush1.bf16.msra.mxu0 %v2190_v41 }
  0x3d   :  { %2026 = vmatmul.mubr.msk.f32.gmra.mrb[10].mxu0 %vm211_vm0, %v186_v24  ;;  %935 = vmatprep.subr.bf16.mxu0 %v2195_v43 }
  0x3e   :  { %2028 = vmatprep.mubr.msk.f32.mxu0 %vm211_vm0, %v187_v26  ;;  %2067 = vmatpush3.bf16.msra.mxu1 %v2186_v33 }
  0x3f   :  { %2050 = vmatmul.mubr.msk.f32.gmra.mrb[10].mxu1 %vm211_vm0, %v202_v30  ;;  %2068 = vmatprep.subr.bf16.mxu1 %v2187_v36 }
  0x40   :  { %2052 = vmatprep.mubr.msk.f32.mxu1 %vm211_vm0, %v203_v32  ;;  %936 = vmatpush1.bf16.msra.mxu0 %v2193_v44 }
  0x41   :  { %2029 = vmatmul.mubr.msk.f32.gmra.mrb[12].mxu0 %vm211_vm0, %v188_v29  ;;  %937 = vmatprep.subr.bf16.mxu0 %v2198_v45 }
  0x42   :  { %2031 = vmatprep.mubr.msk.f32.mxu0 %vm211_vm0, %v189_v31  ;;  %2069 = vmatpush3.bf16.msra.mxu1 %v2187_v36 }
  0x43   :  { %2053 = vmatmul.mubr.msk.f32.gmra.mrb[12].mxu1 %vm211_vm0, %v204_v35  ;;  %2070 = vmatprep.subr.bf16.mxu1 %v2188_v39 }
  0x44   :  { %2055 = vmatprep.mubr.msk.f32.mxu1 %vm211_vm0, %v205_v37  ;;  %938 = vmatpush1.bf16.msra.mxu0 %v2196_v46 }
  0x45   :  { %2032 = vmatmul.mubr.msk.f32.gmra.mrb[14].mxu0 %vm211_vm0, %v190_v34  ;;  %939 = vmatprep.subr.bf16.mxu0 %v2201_v47 }
  0x46   :  { %2071 = vmatpush3.bf16.msra.mxu1 %v2188_v39 }
  0x47   :  { %2056 = vmatmul.mubr.msk.f32.gmra.mrb[14].mxu1 %vm211_vm0, %v206_v38  ;;  %2072 = vmatprep.subr.bf16.mxu1 %v2189_v40 }
  0x48   :  { %940 = vmatpush1.bf16.msra.mxu0 %v2199_v48 }
  0x49   :  { %941 = vmatprep.subr.bf16.mxu0 %v2204_v49 }
  0x4a   :  { %2073 = vmatpush3.bf16.msra.mxu1 %v2189_v40 }
  0x4c   :  { %942 = vmatpush1.bf16.msra.mxu0 %v2202_v50 }
  0x4d   :  { %943 = vmatprep.subr.bf16.mxu0 %v2207_v51 }
  0x50   :  { %944 = vmatpush1.bf16.msra.mxu0 %v2205_v52 }
  0xfc   :  { %v2012_v54 = vpop.f32.mrb[0].mxu0 }
  0xfd   :  { %v380_v55 = vadd.f32 %v2012_v54, %v2572_v53  ;;  %v374_v56 = vpop.f32.mrb[1].mxu0 }
  0xfe   :  { %v375_v57 = vadd.f32 %v2572_v53, %v374_v56  ;;  %v2036_v61 = vpop.f32.mrb[0].mxu1 }
  0xff   :  { %v534_v58 = vmax.f32 %v380_v55, 0.0  ;;  %v460_v0 = vadd.f32 %v2036_v61, %v2572_v53  ;;  %v454_v1 = vpop.f32.mrb[1].mxu1 }
 0x100   :  { %v533_v59 = vmax.f32 %v375_v57, 0.0  ;;  %v2015_v60 = vpop.f32.mrb[2].mxu0  ;;  %v455_v4 = vadd.f32 %v2572_v53, %v454_v1 }
 0x101   :  { %v390_v62 = vadd.f32 %v2015_v60, %v2572_v53  ;;  %v384_v63 = vpop.f32.mrb[3].mxu0  ;;  %v550_v6 = vmax.f32 %v460_v0, 0.0 }
 0x102   :  { %v565_v2 = vpack.c.bf16 %v534_v58, %v533_v59  ;;  %v385_v3 = vadd.f32 %v2572_v53, %v384_v63  ;;  %v549_v9 = vmax.f32 %v455_v4, 0.0  ;;  %v2039_v10 = vpop.f32.mrb[2].mxu1 }
 0x103   :  { %v536_v5 = vmax.f32 %v390_v62, 0.0  ;;  %v470_v13 = vadd.f32 %v2039_v10, %v2572_v53  ;;  %v464_v14 = vpop.f32.mrb[3].mxu1 }
 0x104   :  { %v535_v7 = vmax.f32 %v385_v3, 0.0  ;;  %2074 = vmatprep.mubr.bf16.mxu1 %v565_v2  ;;  %v2018_v8 = vpop.f32.mrb[4].mxu0  ;;  %v2583_v17 = vpack.c.bf16 %v550_v6, %v549_v9  ;;  %v465_v18 = vadd.f32 %v2572_v53, %v464_v14 }
 0x105   :  { %v400_v11 = vadd.f32 %v2018_v8, %v2572_v53  ;;  %v394_v12 = vpop.f32.mrb[5].mxu0  ;;  %v552_v20 = vmax.f32 %v470_v13, 0.0 }
 0x106   :  { %v566_v15 = vpack.c.bf16 %v536_v5, %v535_v7  ;;  %v395_v16 = vadd.f32 %v2572_v53, %v394_v12  ;;  %v551_v23 = vmax.f32 %v465_v18, 0.0  ;;  %v2042_v24 = vpop.f32.mrb[4].mxu1 }
 0x107   :  { %v538_v19 = vmax.f32 %v400_v11, 0.0  ;;  %v480_v27 = vadd.f32 %v2042_v24, %v2572_v53  ;;  %v474_v28 = vpop.f32.mrb[5].mxu1 }
 0x108   :  { %2075 = vmatmul.mubr.bf16.vlgmr.msra.gmra.mrb[16].mxu1 %v566_v15  ;;  %v537_v21 = vmax.f32 %v395_v16, 0.0  ;;  %v2021_v22 = vpop.f32.mrb[6].mxu0  ;;  %v2589_v31 = vpack.c.bf16 %v552_v20, %v551_v23  ;;  %v475_v32 = vadd.f32 %v2572_v53, %v474_v28 }
 0x109   :  { %v410_v25 = vadd.f32 %v2021_v22, %v2572_v53  ;;  %v404_v26 = vpop.f32.mrb[7].mxu0  ;;  %v554_v34 = vmax.f32 %v480_v27, 0.0 }
 0x10a   :  { %v567_v29 = vpack.c.bf16 %v538_v19, %v537_v21  ;;  %v405_v30 = vadd.f32 %v2572_v53, %v404_v26  ;;  %v553_v37 = vmax.f32 %v475_v32, 0.0  ;;  %v2045_v38 = vpop.f32.mrb[6].mxu1 }
 0x10b   :  { %v540_v33 = vmax.f32 %v410_v25, 0.0  ;;  %v490_v41 = vadd.f32 %v2045_v38, %v2572_v53  ;;  %v484_v42 = vpop.f32.mrb[7].mxu1 }
 0x10c   :  { %v539_v35 = vmax.f32 %v405_v30, 0.0  ;;  %2078 = vmatprep.mubr.bf16.mxu1 %v567_v29  ;;  %v2024_v36 = vpop.f32.mrb[8].mxu0  ;;  %v2595_v45 = vpack.c.bf16 %v554_v34, %v553_v37  ;;  %v485_v46 = vadd.f32 %v2572_v53, %v484_v42  ;;  %v2208_v42 = vld [vmem:[#allocation5 + $0x60] ss:$8 sps:$4 sm:$0xff]  }
 0x10d   :  { %v420_v39 = vadd.f32 %v2024_v36, %v2572_v53  ;;  %v414_v40 = vpop.f32.mrb[9].mxu0  ;;  %v556_v48 = vmax.f32 %v490_v41, 0.0  ;;  %v2210_v41 = vld [vmem:[#allocation5 + $0x64] ss:$8 sps:$4 sm:$0xff]  }
 0x10e   :  { %v568_v43 = vpack.c.bf16 %v540_v33, %v539_v35  ;;  %v415_v44 = vadd.f32 %v2572_v53, %v414_v40  ;;  %v555_v51 = vmax.f32 %v485_v46, 0.0  ;;  %v2048_v52 = vpop.f32.mrb[8].mxu1  ;;  %945 = vmatprep.subr.bf16.mxu0 %v2210_v41 }
 0x10f   :  { %v542_v47 = vmax.f32 %v420_v39, 0.0  ;;  %v500_v56 = vadd.f32 %v2048_v52, %v2572_v53  ;;  %v494_v57 = vpop.f32.mrb[9].mxu1  ;;  %946 = vmatpush1.bf16.msra.mxu0 %v2208_v42 }
 0x110   :  { %2079 = vmatmul.mubr.bf16.gmra.mrb[20].mxu1 %v568_v43  ;;  %v541_v49 = vmax.f32 %v415_v44, 0.0  ;;  %v2027_v50 = vpop.f32.mrb[10].mxu0  ;;  %v576_v60 = vpack.c.bf16 %v556_v48, %v555_v51  ;;  %v495_v61 = vadd.f32 %v2572_v53, %v494_v57  ;;  %v2211_v43 = vld [vmem:[#allocation5 + $0x70] ss:$8 sps:$4 sm:$0xff]   ;;  %v2354_v44 = vmov 0  }
 0x111   :  { %v430_v54 = vadd.f32 %v2027_v50, %v2572_v53  ;;  %v424_v55 = vpop.f32.mrb[11].mxu0  ;;  %v558_v63 = vmax.f32 %v500_v56, 0.0  ;;  %965 = vmatprep.mubr.bf16.mxu0 %v2354_v44  ;;  %2178 = vset.pattern.permute.xlu0 %v2354_v44 }
 0x112   :  { %v569_v58 = vpack.c.bf16 %v542_v47, %v541_v49  ;;  %v425_v59 = vadd.f32 %v2572_v53, %v424_v55  ;;  %v557_v2 = vmax.f32 %v495_v61, 0.0  ;;  %v2051_v3 = vpop.f32.mrb[10].mxu1 }
 0x113   :  { %v544_v62 = vmax.f32 %v430_v54, 0.0  ;;  %v510_v6 = vadd.f32 %v2051_v3, %v2572_v53  ;;  %v504_v7 = vpop.f32.mrb[11].mxu1 }
 0x114   :  { %v543_v0 = vmax.f32 %v425_v59, 0.0  ;;  %2082 = vmatprep.mubr.bf16.mxu1 %v569_v58  ;;  %v2030_v1 = vpop.f32.mrb[12].mxu0  ;;  %v577_v10 = vpack.c.bf16 %v558_v63, %v557_v2  ;;  %v505_v11 = vadd.f32 %v2572_v53, %v504_v7 }
 0x115   :  { %v440_v4 = vadd.f32 %v2030_v1, %v2572_v53  ;;  %v434_v5 = vpop.f32.mrb[13].mxu0  ;;  %v560_v13 = vmax.f32 %v510_v6, 0.0 }
 0x116   :  { %v570_v8 = vpack.c.bf16 %v544_v62, %v543_v0  ;;  %v435_v9 = vadd.f32 %v2572_v53, %v434_v5  ;;  %v559_v16 = vmax.f32 %v505_v11, 0.0  ;;  %v2054_v18 = vpop.f32.mrb[12].mxu1 }
 0x117   :  { %v546_v12 = vmax.f32 %v440_v4, 0.0  ;;  %v520_v21 = vadd.f32 %v2054_v18, %v2572_v53  ;;  %v514_v22 = vpop.f32.mrb[13].mxu1 }
 0x118   :  { %2083 = vmatmul.mubr.bf16.gmra.mrb[24].mxu1 %v570_v8  ;;  %v545_v14 = vmax.f32 %v435_v9, 0.0  ;;  %v2033_v15 = vpop.f32.mrb[14].mxu0  ;;  %v578_v25 = vpack.c.bf16 %v560_v13, %v559_v16  ;;  %v515_v26 = vadd.f32 %v2572_v53, %v514_v22 }
 0x119   :  { %v450_v19 = vadd.f32 %v2033_v15, %v2572_v53  ;;  %v444_v20 = vpop.f32.mrb[15].mxu0  ;;  %v562_v28 = vmax.f32 %v520_v21, 0.0 }
 0x11a   :  { %v571_v23 = vpack.c.bf16 %v546_v12, %v545_v14  ;;  %v445_v24 = vadd.f32 %v2572_v53, %v444_v20  ;;  %v561_v30 = vmax.f32 %v515_v26, 0.0  ;;  %v2057_v32 = vpop.f32.mrb[14].mxu1 }
 0x11b   :  { %v548_v27 = vmax.f32 %v450_v19, 0.0  ;;  %v530_v33 = vadd.f32 %v2057_v32, %v2572_v53  ;;  %v524_v34 = vpop.f32.mrb[15].mxu1 }
 0x11c   :  { %v547_v29 = vmax.f32 %v445_v24, 0.0  ;;  %2086 = vmatprep.mubr.bf16.mxu1 %v571_v23  ;;  %v579_v36 = vpack.c.bf16 %v562_v28, %v561_v30  ;;  %v525_v37 = vadd.f32 %v2572_v53, %v524_v34  ;;  %v2213_v53 = vld [vmem:[#allocation5 + $0x74] ss:$8 sps:$4 sm:$0xff]  }
 0x11d   :  { %v564_v38 = vmax.f32 %v530_v33, 0.0  ;;  %947 = vmatprep.subr.bf16.mxu0 %v2213_v53 }
 0x11e   :  { %v572_v35 = vpack.c.bf16 %v548_v27, %v547_v29  ;;  %v563_v39 = vmax.f32 %v525_v37, 0.0  ;;  %948 = vmatpush1.bf16.msra.mxu0 %v2211_v43 }
 0x120   :  { %2087 = vmatmul.mubr.bf16.gmra.mrb[28].mxu1 %v572_v35  ;;  %v580_v40 = vpack.c.bf16 %v564_v38, %v563_v39 }
 0x121   :  { %2090 = vmatprep.mubr.bf16.mxu1 %v2583_v17  ;;  %v2617_v17 = vld [vmem:[#allocation2 + $0x9] ss:$0 sm:$0xff] }
 0x128   :  { %2091 = vmatmul.mubr.bf16.gmra.mrb[32].mxu1 %v2589_v31 }
 0x129   :  { %2094 = vmatprep.mubr.bf16.mxu1 %v2595_v45 }
 0x130   :  { %2095 = vmatmul.mubr.bf16.gmra.mrb[36].mxu1 %v576_v60 }
 0x131   :  { %2098 = vmatprep.mubr.bf16.mxu1 %v577_v10 }
 0x138   :  { %2099 = vmatmul.mubr.bf16.gmra.mrb[40].mxu1 %v578_v25 }
 0x139   :  { %2102 = vmatprep.mubr.bf16.mxu1 %v579_v36 }
 0x140   :  { %2103 = vmatmul.mubr.bf16.gmra.mrb[44].mxu1 %v580_v40 }
 0x1db   :  { %v2076_v31 = vpop.f32.mrb[16].mxu1 }
 0x1dc   :  { %v676_v45 = vadd.f32 %v2076_v31, %v2617_v17  ;;  %v667_v46 = vpop.f32.mrb[17].mxu1 }
 0x1dd   :  { %v668_v47 = vadd.f32 %v2617_v17, %v667_v46  ;;  %v2077_v48 = vpop.f32.mrb[18].mxu1 }
 0x1de   :  { %v679_v49 = vadd.f32 %v2077_v48, %v2617_v17  ;;  %v670_v50 = vpop.f32.mrb[19].mxu1  ;;  %v796_v52 = vmax.f32 %v676_v45, 0.0 }
 0x1df   :  { %v671_v51 = vadd.f32 %v2617_v17, %v670_v50  ;;  %v794_v55 = vmax.f32 %v668_v47, 0.0 }
 0x1e0   :  { %v797_v54 = vmax.f32 %v679_v49, 0.0 }
 0x1e1   :  { %v795_v56 = vmax.f32 %v671_v51, 0.0 }
 0x1e2   :  { %v827_v57 = vpack.c.bf16 %v797_v54, %v796_v52 }
 0x1e3   :  { %v826_v58 = vpack.c.bf16 %v795_v56, %v794_v55  ;;  %v2080_v59 = vpop.f32.mrb[20].mxu1 }
 0x1e4   :  { %v692_v60 = vadd.f32 %v2080_v59, %v2617_v17  ;;  %v683_v61 = vpop.f32.mrb[21].mxu1 }
 0x1e5   :  { %966 = vmatmul.mubr.bf16.vlgmr.msra.gmra.mrb[16].mxu0 %v826_v58  ;;  %v684_v62 = vadd.f32 %v2617_v17, %v683_v61  ;;  %v2081_v63 = vpop.f32.mrb[22].mxu1 }
 0x1e6   :  { %v800_v0 = vmax.f32 %v692_v60, 0.0  ;;  %v695_v1 = vadd.f32 %v2081_v63, %v2617_v17  ;;  %v686_v2 = vpop.f32.mrb[23].mxu1  ;;  %975 = vmatprep.mubr.bf16.mxu0 %v2354_v44 }
 0x1e7   :  { %v798_v3 = vmax.f32 %v684_v62, 0.0  ;;  %v687_v4 = vadd.f32 %v2617_v17, %v686_v2 }
 0x1e8   :  { %v801_v5 = vmax.f32 %v695_v1, 0.0 }
 0x1e9   :  { %v799_v6 = vmax.f32 %v687_v4, 0.0 }
 0x1ea   :  { %v829_v7 = vpack.c.bf16 %v801_v5, %v800_v0 }
 0x1eb   :  { %v828_v8 = vpack.c.bf16 %v799_v6, %v798_v3  ;;  %v2084_v9 = vpop.f32.mrb[24].mxu1 }
 0x1ec   :  { %v708_v10 = vadd.f32 %v2084_v9, %v2617_v17  ;;  %v699_v11 = vpop.f32.mrb[25].mxu1 }
 0x1ed   :  { %976 = vmatmul.mubr.bf16.gmra.mrb[20].mxu0 %v827_v57  ;;  %v700_v12 = vadd.f32 %v2617_v17, %v699_v11  ;;  %v2085_v13 = vpop.f32.mrb[26].mxu1 }
 0x1ee   :  { %985 = vmatprep.mubr.bf16.mxu0 %v2354_v44  ;;  %v804_v14 = vmax.f32 %v708_v10, 0.0  ;;  %v711_v15 = vadd.f32 %v2085_v13, %v2617_v17  ;;  %v702_v16 = vpop.f32.mrb[27].mxu1 }
 0x1ef   :  { %v802_v18 = vmax.f32 %v700_v12, 0.0  ;;  %v703_v19 = vadd.f32 %v2617_v17, %v702_v16 }
 0x1f0   :  { %v805_v20 = vmax.f32 %v711_v15, 0.0 }
 0x1f1   :  { %v803_v21 = vmax.f32 %v703_v19, 0.0 }
 0x1f2   :  { %v831_v22 = vpack.c.bf16 %v805_v20, %v804_v14 }
 0x1f3   :  { %v830_v23 = vpack.c.bf16 %v803_v21, %v802_v18  ;;  %v2088_v24 = vpop.f32.mrb[28].mxu1 }
 0x1f4   :  { %v724_v25 = vadd.f32 %v2088_v24, %v2617_v17  ;;  %v715_v26 = vpop.f32.mrb[29].mxu1 }
 0x1f5   :  { %986 = vmatmul.mubr.bf16.gmra.mrb[24].mxu0 %v828_v8  ;;  %v716_v27 = vadd.f32 %v2617_v17, %v715_v26  ;;  %v2089_v28 = vpop.f32.mrb[30].mxu1 }
 0x1f6   :  { %995 = vmatprep.mubr.bf16.mxu0 %v2354_v44  ;;  %v808_v29 = vmax.f32 %v724_v25, 0.0  ;;  %v727_v30 = vadd.f32 %v2089_v28, %v2617_v17  ;;  %v718_v32 = vpop.f32.mrb[31].mxu1 }
 0x1f7   :  { %v806_v33 = vmax.f32 %v716_v27, 0.0  ;;  %v719_v34 = vadd.f32 %v2617_v17, %v718_v32 }
 0x1f8   :  { %v809_v35 = vmax.f32 %v727_v30, 0.0 }
 0x1f9   :  { %v807_v36 = vmax.f32 %v719_v34, 0.0  ;;  %v2219_v34 = vld [vmem:[#allocation5 + $0x94] ss:$8 sps:$4 sm:$0xff]  }
 0x1fa   :  { %v2638_v37 = vpack.c.bf16 %v809_v35, %v808_v29  ;;  %v2217_v35 = vld [vmem:[#allocation5 + $0x90] ss:$8 sps:$4 sm:$0xff]  }
 0x1fb   :  { %v832_v38 = vpack.c.bf16 %v807_v36, %v806_v33  ;;  %v2092_v39 = vpop.f32.mrb[32].mxu1  ;;  %v2214_v33 = vld [vmem:[#allocation5 + $0x80] ss:$8 sps:$4 sm:$0xff]   ;;  %v2222_v36 = vld [vmem:[#allocation5 + $0xa4] ss:$8 sps:$4 sm:$0xff]  }
 0x1fc   :  { %v740_v40 = vadd.f32 %v2092_v39, %v2617_v17  ;;  %v731_v41 = vpop.f32.mrb[33].mxu1  ;;  %v2223_v39 = vld [vmem:[#allocation5 + $0xb0] ss:$8 sps:$4 sm:$0xff]  }
 0x1fd   :  { %996 = vmatmul.mubr.bf16.gmra.mrb[28].mxu0 %v829_v7  ;;  %v732_v42 = vadd.f32 %v2617_v17, %v731_v41  ;;  %v2093_v53 = vpop.f32.mrb[34].mxu1  ;;  %v2226_v41 = vld [vmem:[#allocation5 + $0xc0] ss:$8 sps:$4 sm:$0xff]  }
 0x1fe   :  { %1005 = vmatprep.mubr.bf16.mxu0 %v2354_v44  ;;  %v812_v43 = vmax.f32 %v740_v40, 0.0  ;;  %v743_v31 = vadd.f32 %v2093_v53, %v2617_v17  ;;  %v734_v45 = vpop.f32.mrb[35].mxu1  ;;  %v2228_v40 = vld [vmem:[#allocation5 + $0xc4] ss:$8 sps:$4 sm:$0xff]   ;;  %v843_v53 = vlaneseq }
 0x1ff   :  { %v810_v46 = vmax.f32 %v732_v42, 0.0  ;;  %v735_v47 = vadd.f32 %v2617_v17, %v734_v45  ;;  %v2229_v42 = vld [vmem:[#allocation5 + $0xd0] ss:$8 sps:$4 sm:$0xff]  }
 0x200   :  { %v813_v48 = vmax.f32 %v743_v31, 0.0  ;;  %v2232_v31 = vld [vmem:[#allocation5 + $0xe0] ss:$8 sps:$4 sm:$0xff]   ;;  %v2669_v45 = vshrl.u32 %v843_v53, 7 }
 0x201   :  { %v811_v49 = vmax.f32 %v735_v47, 0.0  ;;  %v2235_v47 = vld [vmem:[#allocation5 + $0xf0] ss:$8 sps:$4 sm:$0xff]  }
 0x202   :  { %v835_v50 = vpack.c.bf16 %v813_v48, %v812_v43  ;;  %v2234_v43 = vld [vmem:[#allocation5 + $0xe4] ss:$8 sps:$4 sm:$0xff]   ;;  %v845_v48 = vsub.s32 0, %v2669_v45 }
 0x203   :  { %v834_v51 = vpack.c.bf16 %v811_v49, %v810_v46  ;;  %v2096_v52 = vpop.f32.mrb[36].mxu1  ;;  %v2237_v46 = vld [vmem:[#allocation5 + $0xf4] ss:$8 sps:$4 sm:$0xff]   ;;  %v74_v49 = vld [vmem:[%s2846_s3] ss:$8 sm:$0x3] }
 0x204   :  { %v756_v54 = vadd.f32 %v2096_v52, %v2617_v17  ;;  %v747_v55 = vpop.f32.mrb[37].mxu1  ;;  %v2238_v52 = vld [vmem:[#allocation5 + $0x100] ss:$8 sps:$4 sm:$0xff]  }
 0x205   :  { %1006 = vmatmul.mubr.bf16.gmra.mrb[32].mxu0 %v830_v23  ;;  %v748_v56 = vadd.f32 %v2617_v17, %v747_v55  ;;  %v2097_v57 = vpop.f32.mrb[38].mxu1 }
 0x206   :  { %1015 = vmatprep.mubr.bf16.mxu0 %v2354_v44  ;;  %v816_v58 = vmax.f32 %v756_v54, 0.0  ;;  %v759_v59 = vadd.f32 %v2097_v57, %v2617_v17  ;;  %v750_v60 = vpop.f32.mrb[39].mxu1  ;;  %v2678_v54 = vrot.slane %v74_v49, %v845_v48  ;;  %v2241_v57 = vld [vmem:[#allocation5 + $0x110] ss:$8 sps:$4 sm:$0xff]  }
 0x207   :  { %v814_v61 = vmax.f32 %v748_v56, 0.0  ;;  %v751_v62 = vadd.f32 %v2617_v17, %v750_v60  ;;  %v2243_v56 = vld [vmem:[#allocation5 + $0x114] ss:$8 sps:$4 sm:$0xff]  }
 0x208   :  { %v817_v63 = vmax.f32 %v759_v59, 0.0 }
 0x209   :  { %v815_v0 = vmax.f32 %v751_v62, 0.0 }
 0x20a   :  { %v837_v1 = vpack.c.bf16 %v817_v63, %v816_v58  ;;  %v2246_v63 = vld [vmem:[#allocation5 + $0x124] ss:$8 sps:$4 sm:$0xff]  }
 0x20b   :  { %v836_v2 = vpack.c.bf16 %v815_v0, %v814_v61  ;;  %v2100_v3 = vpop.f32.mrb[40].mxu1 }
 0x20c   :  { %v772_v4 = vadd.f32 %v2100_v3, %v2617_v17  ;;  %v763_v5 = vpop.f32.mrb[41].mxu1 }
 0x20d   :  { %1016 = vmatmul.mubr.bf16.gmra.mrb[36].mxu0 %v831_v22  ;;  %v764_v6 = vadd.f32 %v2617_v17, %v763_v5  ;;  %v2101_v7 = vpop.f32.mrb[42].mxu1 }
 0x20e   :  { %1025 = vmatprep.mubr.bf16.mxu0 %v2354_v44  ;;  %v820_v8 = vmax.f32 %v772_v4, 0.0  ;;  %v775_v9 = vadd.f32 %v2101_v7, %v2617_v17  ;;  %v766_v10 = vpop.f32.mrb[43].mxu1 }
 0x20f   :  { %v818_v11 = vmax.f32 %v764_v6, 0.0  ;;  %v767_v12 = vadd.f32 %v2617_v17, %v766_v10  ;;  %v2247_v10 = vld [vmem:[#allocation5 + $0x130] ss:$8 sps:$4 sm:$0xff]  }
 0x210   :  { %v821_v13 = vmax.f32 %v775_v9, 0.0 }
 0x211   :  { %v819_v14 = vmax.f32 %v767_v12, 0.0 }
 0x212   :  { %v839_v15 = vpack.c.bf16 %v821_v13, %v820_v8  ;;  %v2249_v8 = vld [vmem:[#allocation5 + $0x134] ss:$8 sps:$4 sm:$0xff]  }
 0x213   :  { %v838_v16 = vpack.c.bf16 %v819_v14, %v818_v11  ;;  %v2104_v18 = vpop.f32.mrb[44].mxu1 }
 0x214   :  { %v788_v19 = vadd.f32 %v2104_v18, %v2617_v17  ;;  %v779_v20 = vpop.f32.mrb[45].mxu1  ;;  %v2252_v18 = vld [vmem:[#allocation5 + $0x144] ss:$8 sps:$4 sm:$0xff]  }
 0x215   :  { %1026 = vmatmul.mubr.bf16.gmra.mrb[40].mxu0 %v832_v38  ;;  %v780_v21 = vadd.f32 %v2617_v17, %v779_v20  ;;  %v2105_v22 = vpop.f32.mrb[46].mxu1  ;;  %v2225_v38 = vld [vmem:[#allocation5 + $0xb4] ss:$8 sps:$4 sm:$0xff]  }
 0x216   :  { %1035 = vmatprep.mubr.bf16.mxu0 %v2354_v44  ;;  %v824_v23 = vmax.f32 %v788_v19, 0.0  ;;  %v791_v24 = vadd.f32 %v2105_v22, %v2617_v17  ;;  %v782_v25 = vpop.f32.mrb[47].mxu1 }
 0x217   :  { %v822_v26 = vmax.f32 %v780_v21, 0.0  ;;  %v783_v27 = vadd.f32 %v2617_v17, %v782_v25  ;;  %v2216_v17 = vld [vmem:[#allocation5 + $0x84] ss:$8 sps:$4 sm:$0xff]   ;;  %v2250_v21 = vld [vmem:[#allocation5 + $0x140] ss:$8 sps:$4 sm:$0xff]  }
 0x218   :  { %v825_v28 = vmax.f32 %v791_v24, 0.0  ;;  %1526 = vmatprep.subr.bf16.mxu1 %v2216_v17 }
 0x219   :  { %v823_v29 = vmax.f32 %v783_v27, 0.0  ;;  %1527 = vmatpush1.bf16.msra.mxu1 %v2214_v33  ;;  %v2255_v27 = vld [vmem:[#allocation5 + $0x154] ss:$8 sps:$4 sm:$0xff]  }
 0x21a   :  { %v841_v30 = vpack.c.bf16 %v825_v28, %v824_v23  ;;  %1528 = vmatprep.subr.bf16.mxu1 %v2219_v34 }
 0x21b   :  { %v840_v32 = vpack.c.bf16 %v823_v29, %v822_v26  ;;  %v2253_v29 = vld [vmem:[#allocation5 + $0x150] ss:$8 sps:$4 sm:$0xff]  }
 0x21d   :  { %1036 = vmatmul.mubr.bf16.gmra.mrb[44].mxu0 %v2638_v37  ;;  %1529 = vmatpush1.bf16.msra.mxu1 %v2217_v35  ;;  %v2220_v37 = vld [vmem:[#allocation5 + $0xa0] ss:$8 sps:$4 sm:$0xff]  }
 0x21e   :  { %1045 = vmatprep.mubr.bf16.mxu0 %v2354_v44  ;;  %1530 = vmatprep.subr.bf16.mxu1 %v2222_v36  ;;  %v2256_v36 = vld [vmem:[#allocation5 + $0x160] ss:$8 sps:$4 sm:$0xff]  }
 0x221   :  { %1531 = vmatpush1.bf16.msra.mxu1 %v2220_v37 }
 0x222   :  { %1532 = vmatprep.subr.bf16.mxu1 %v2225_v38 }
 0x225   :  { %1046 = vmatmul.mubr.bf16.gmra.mrb[48].mxu0 %v834_v51  ;;  %1533 = vmatpush1.bf16.msra.mxu1 %v2223_v39  ;;  %v2240_v51 = vld [vmem:[#allocation5 + $0x104] ss:$8 sps:$4 sm:$0xff]  }
 0x226   :  { %1055 = vmatprep.mubr.bf16.mxu0 %v2354_v44  ;;  %1534 = vmatprep.subr.bf16.mxu1 %v2228_v40  ;;  %v2261_v40 = vld [vmem:[#allocation5 + $0x174] ss:$8 sps:$4 sm:$0xff]  }
 0x229   :  { %1535 = vmatpush1.bf16.msra.mxu1 %v2226_v41 }
 0x22d   :  { %1056 = vmatmul.mubr.bf16.gmra.mrb[52].mxu0 %v835_v50  ;;  %v849_v50 = vsub.s32 1, %v2669_v45 }
 0x22e   :  { %1065 = vmatprep.mubr.bf16.mxu0 %v2354_v44 }
 0x22f   :  { %v2682_v55 = vrot.slane %v74_v49, %v849_v50 }
 0x235   :  { %1066 = vmatmul.mubr.bf16.gmra.mrb[56].mxu0 %v836_v2  ;;  %v2244_v2 = vld [vmem:[#allocation5 + $0x120] ss:$8 sps:$4 sm:$0xff]  }
 0x236   :  { %1075 = vmatprep.mubr.bf16.mxu0 %v2354_v44 }
 0x23d   :  { %1076 = vmatmul.mubr.bf16.gmra.mrb[60].mxu0 %v837_v1 }
 0x23e   :  { %1085 = vmatprep.mubr.bf16.mxu0 %v2354_v44 }
 0x245   :  { %1086 = vmatmul.mubr.bf16.gmra.mrb[64].mxu0 %v838_v16 }
 0x246   :  { %1095 = vmatprep.mubr.bf16.mxu0 %v2354_v44 }
 0x24d   :  { %1096 = vmatmul.mubr.bf16.gmra.mrb[68].mxu0 %v839_v15 }
 0x24e   :  { %1105 = vmatprep.mubr.bf16.mxu0 %v2354_v44 }
 0x255   :  { %1106 = vmatmul.mubr.bf16.gmra.mrb[72].mxu0 %v840_v32 }
 0x256   :  { %1115 = vmatprep.mubr.bf16.mxu0 %v2354_v44  ;;  %v2231_v44 = vld [vmem:[#allocation5 + $0xd4] ss:$8 sps:$4 sm:$0xff]  }
 0x257   :  { %1536 = vmatprep.subr.bf16.mxu1 %v2231_v44 }
 0x258   :  { %1537 = vmatpush1.bf16.msra.mxu1 %v2229_v42 }
 0x259   :  { %1538 = vmatprep.subr.bf16.mxu1 %v2234_v43 }
 0x25c   :  { %1539 = vmatpush1.bf16.msra.mxu1 %v2232_v31  ;;  %v2259_v31 = vld [vmem:[#allocation5 + $0x170] ss:$8 sps:$4 sm:$0xff]  }
 0x25d   :  { %1116 = vmatmul.mubr.bf16.gmra.mrb[76].mxu0 %v841_v30  ;;  %1540 = vmatprep.subr.bf16.mxu1 %v2237_v46  ;;  %v2258_v30 = vld [vmem:[#allocation5 + $0x164] ss:$8 sps:$4 sm:$0xff]  }
 0x260   :  { %1541 = vmatpush1.bf16.msra.mxu1 %v2235_v47 }
 0x261   :  { %1542 = vmatprep.subr.bf16.mxu1 %v2240_v51 }
 0x264   :  { %1543 = vmatpush1.bf16.msra.mxu1 %v2238_v52 }
 0x265   :  { %1544 = vmatprep.subr.bf16.mxu1 %v2243_v56 }
 0x268   :  { %1545 = vmatpush1.bf16.msra.mxu1 %v2241_v57 }
 0x269   :  { %1546 = vmatprep.subr.bf16.mxu1 %v2246_v63 }
 0x26c   :  { %1547 = vmatpush1.bf16.msra.mxu1 %v2244_v2  ;;  %v2262_v2 = vld [vmem:[%s2847_s4 + $0x80] sm:$0xff]  }
 0x26d   :  { %1548 = vmatprep.subr.bf16.mxu1 %v2249_v8 }
 0x270   :  { %1549 = vmatpush1.bf16.msra.mxu1 %v2247_v10 }
 0x271   :  { %1550 = vmatprep.subr.bf16.mxu1 %v2252_v18 }
 0x274   :  { %1551 = vmatpush1.bf16.msra.mxu1 %v2250_v21 }
 0x275   :  { %1552 = vmatprep.subr.bf16.mxu1 %v2255_v27 }
 0x278   :  { %1553 = vmatpush1.bf16.msra.mxu1 %v2253_v29 }
 0x279   :  { %1554 = vmatprep.subr.bf16.mxu1 %v2258_v30 }
 0x27c   :  { %1555 = vmatpush1.bf16.msra.mxu1 %v2256_v36 }
 0x27d   :  { %1556 = vmatprep.subr.bf16.mxu1 %v2261_v40 }
 0x280   :  { %1557 = vmatpush1.bf16.msra.mxu1 %v2259_v31 }
 0x281   :  { %1969 = vmatprep.subr.bf16.mxu1 %v2262_v2 }
 0x2b8   :  { %v967_v58 = vpop.f32.mrb[16].mxu0 }
 0x2b9   :  { %v968_v59 = vadd.f32 %v967_v58, %v2678_v54  ;;  %v969_v60 = vpop.f32.mrb[17].mxu0 }
 0x2ba   :  { %v970_v61 = vadd.f32 %v969_v60, %v2682_v55  ;;  %v971_v62 = vpop.f32.mrb[18].mxu0 }
 0x2bb   :  { %v972_v0 = vadd.f32 %v971_v62, %v2678_v54  ;;  %v973_v1 = vpop.f32.mrb[19].mxu0  ;;  %v1126_v4 = vmax.f32 %v968_v59, 0.0 }
 0x2bc   :  { %v974_v3 = vadd.f32 %v973_v1, %v2682_v55  ;;  %v1127_v6 = vmax.f32 %v970_v61, 0.0  ;;  %v1290_v1 = vld [vmem:[%s2844_s1] sm:$0x3] }
 0x2bd   :  { %v1128_v5 = vmax.f32 %v972_v0, 0.0  ;;  %1293 = vperm.xlu0 %2178, %v1290_v1  }
 0x2be   :  { %v1129_v7 = vmax.f32 %v974_v3, 0.0 }
 0x2bf   :  { %v1190_v9 = vpack.c.bf16 %v1128_v5, %v1126_v4  ;;  %v2355_v5 = vmov 2  }
 0x2c0   :  { %v1191_v11 = vpack.c.bf16 %v1129_v7, %v1127_v6  ;;  %v977_v12 = vpop.f32.mrb[20].mxu0  ;;  %2180 = vset.pattern.permute.xlu1 %v2355_v5 }
 0x2c1   :  { %v978_v13 = vadd.f32 %v977_v12, %v2678_v54  ;;  %v979_v14 = vpop.f32.mrb[21].mxu0  ;;  %1336 = vperm.xlu1 %2180, %v1290_v1  }
 0x2c2   :  { %v980_v15 = vadd.f32 %v979_v14, %v2682_v55  ;;  %v981_v16 = vpop.f32.mrb[22].mxu0  ;;  %v2356_v14 = vmov 1  }
 0x2c3   :  { %v982_v19 = vadd.f32 %v981_v16, %v2678_v54  ;;  %v983_v20 = vpop.f32.mrb[23].mxu0  ;;  %v1130_v23 = vmax.f32 %v978_v13, 0.0  ;;  %2179 = vset.pattern.permute.xlu0 %v2356_v14 }
 0x2c4   :  { %v984_v22 = vadd.f32 %v983_v20, %v2682_v55  ;;  %v1131_v25 = vmax.f32 %v980_v15, 0.0  ;;  %1320 = vperm.xlu0 %2179, %v1290_v1  }
 0x2c5   :  { %v1132_v24 = vmax.f32 %v982_v19, 0.0 }
 0x2c6   :  { %v1133_v26 = vmax.f32 %v984_v22, 0.0 }
 0x2c7   :  { %v1192_v28 = vpack.c.bf16 %v1132_v24, %v1130_v23 }
 0x2c8   :  { %v1193_v32 = vpack.c.bf16 %v1133_v26, %v1131_v25  ;;  %v987_v17 = vpop.f32.mrb[24].mxu0  ;;  %2181 = vset.pattern.permute.xlu0 %v2355_v5 }
 0x2c9   :  { %v1222_v33 = vmax.bf16 %v1192_v28, %v1190_v9  ;;  %v988_v34 = vadd.f32 %v987_v17, %v2678_v54  ;;  %v989_v35 = vpop.f32.mrb[25].mxu0 }
 0x2ca   :  { %v1239_v37 = vmax.bf16 %v1193_v32, %v1191_v11  ;;  %v990_v38 = vadd.f32 %v989_v35, %v2682_v55  ;;  %v991_v39 = vpop.f32.mrb[26].mxu0 }
 0x2cb   :  { %v992_v41 = vadd.f32 %v991_v39, %v2678_v54  ;;  %v993_v44 = vpop.f32.mrb[27].mxu0  ;;  %v1134_v53 = vmax.f32 %v988_v34, 0.0 }
 0x2cc   :  { %v994_v42 = vadd.f32 %v993_v44, %v2682_v55  ;;  %v1135_v46 = vmax.f32 %v990_v38, 0.0 }
 0x2cd   :  { %v1136_v43 = vmax.f32 %v992_v41, 0.0 }
 0x2ce   :  { %v1137_v47 = vmax.f32 %v994_v42, 0.0 }
 0x2cf   :  { %v1194_v49 = vpack.c.bf16 %v1136_v43, %v1134_v53 }
 0x2d0   :  { %v1195_v51 = vpack.c.bf16 %v1137_v47, %v1135_v46  ;;  %v997_v52 = vpop.f32.mrb[28].mxu0 }
 0x2d1   :  { %v1223_v56 = vmax.bf16 %v1222_v33, %v1194_v49  ;;  %v998_v57 = vadd.f32 %v997_v52, %v2678_v54  ;;  %v999_v58 = vpop.f32.mrb[29].mxu0 }
 0x2d2   :  { %v1240_v59 = vmax.bf16 %v1239_v37, %v1195_v51  ;;  %v1000_v60 = vadd.f32 %v999_v58, %v2682_v55  ;;  %v1001_v61 = vpop.f32.mrb[30].mxu0 }
 0x2d3   :  { %v1002_v62 = vadd.f32 %v1001_v61, %v2678_v54  ;;  %v1003_v63 = vpop.f32.mrb[31].mxu0  ;;  %v1138_v3 = vmax.f32 %v998_v57, 0.0 }
 0x2d4   :  { %v1004_v0 = vadd.f32 %v1003_v63, %v2682_v55  ;;  %v1139_v6 = vmax.f32 %v1000_v60, 0.0 }
 0x2d5   :  { %v1140_v4 = vmax.f32 %v1002_v62, 0.0 }
 0x2d6   :  { %v1141_v7 = vmax.f32 %v1004_v0, 0.0 }
 0x2d7   :  { %v1196_v8 = vpack.c.bf16 %v1140_v4, %v1138_v3 }
 0x2d8   :  { %v1197_v9 = vpack.c.bf16 %v1141_v7, %v1139_v6  ;;  %v1007_v10 = vpop.f32.mrb[32].mxu0 }
 0x2d9   :  { %v1224_v11 = vmax.bf16 %v1223_v56, %v1196_v8  ;;  %v1008_v12 = vadd.f32 %v1007_v10, %v2678_v54  ;;  %v1009_v13 = vpop.f32.mrb[33].mxu0 }
 0x2da   :  { %v1241_v15 = vmax.bf16 %v1240_v59, %v1197_v9  ;;  %v1010_v16 = vadd.f32 %v1009_v13, %v2682_v55  ;;  %v1011_v18 = vpop.f32.mrb[34].mxu0 }
 0x2db   :  { %v1012_v19 = vadd.f32 %v1011_v18, %v2678_v54  ;;  %v1013_v20 = vpop.f32.mrb[35].mxu0  ;;  %v1142_v22 = vmax.f32 %v1008_v12, 0.0 }
 0x2dc   :  { %v1014_v21 = vadd.f32 %v1013_v20, %v2682_v55  ;;  %v1143_v24 = vmax.f32 %v1010_v16, 0.0 }
 0x2dd   :  { %v1144_v23 = vmax.f32 %v1012_v19, 0.0 }
 0x2de   :  { %v1145_v25 = vmax.f32 %v1014_v21, 0.0 }
 0x2df   :  { %v1198_v26 = vpack.c.bf16 %v1144_v23, %v1142_v22 }
 0x2e0   :  { %v1199_v27 = vpack.c.bf16 %v1145_v25, %v1143_v24  ;;  %v1017_v28 = vpop.f32.mrb[36].mxu0 }
 0x2e1   :  { %v1225_v29 = vmax.bf16 %v1224_v11, %v1198_v26  ;;  %v1018_v30 = vadd.f32 %v1017_v28, %v2678_v54  ;;  %v1019_v32 = vpop.f32.mrb[37].mxu0 }
 0x2e2   :  { %v1242_v17 = vmax.bf16 %v1241_v15, %v1199_v27  ;;  %v1020_v33 = vadd.f32 %v1019_v32, %v2682_v55  ;;  %v1021_v34 = vpop.f32.mrb[38].mxu0 }
 0x2e3   :  { %v1022_v35 = vadd.f32 %v1021_v34, %v2678_v54  ;;  %v1023_v36 = vpop.f32.mrb[39].mxu0  ;;  %v1146_v38 = vmax.f32 %v1018_v30, 0.0 }
 0x2e4   :  { %v1024_v37 = vadd.f32 %v1023_v36, %v2682_v55  ;;  %v1147_v40 = vmax.f32 %v1020_v33, 0.0 }
 0x2e5   :  { %v1148_v39 = vmax.f32 %v1022_v35, 0.0 }
 0x2e6   :  { %v1149_v41 = vmax.f32 %v1024_v37, 0.0 }
 0x2e7   :  { %v1200_v44 = vpack.c.bf16 %v1148_v39, %v1146_v38 }
 0x2e8   :  { %v1201_v42 = vpack.c.bf16 %v1149_v41, %v1147_v40  ;;  %v1027_v53 = vpop.f32.mrb[40].mxu0 }
 0x2e9   :  { %v1226_v43 = vmax.bf16 %v1225_v29, %v1200_v44  ;;  %v1028_v31 = vadd.f32 %v1027_v53, %v2678_v54  ;;  %v1029_v46 = vpop.f32.mrb[41].mxu0 }
 0x2ea   :  { %v1243_v47 = vmax.bf16 %v1242_v17, %v1201_v42  ;;  %v1030_v49 = vadd.f32 %v1029_v46, %v2682_v55  ;;  %v1031_v51 = vpop.f32.mrb[42].mxu0 }
 0x2eb   :  { %v1032_v52 = vadd.f32 %v1031_v51, %v2678_v54  ;;  %v1033_v56 = vpop.f32.mrb[43].mxu0  ;;  %v1150_v58 = vmax.f32 %v1028_v31, 0.0 }
 0x2ec   :  { %v1034_v57 = vadd.f32 %v1033_v56, %v2682_v55  ;;  %v1151_v60 = vmax.f32 %v1030_v49, 0.0 }
 0x2ed   :  { %v1152_v59 = vmax.f32 %v1032_v52, 0.0 }
 0x2ee   :  { %v1153_v61 = vmax.f32 %v1034_v57, 0.0 }
 0x2ef   :  { %v1202_v62 = vpack.c.bf16 %v1152_v59, %v1150_v58 }
 0x2f0   :  { %v1203_v63 = vpack.c.bf16 %v1153_v61, %v1151_v60  ;;  %v1037_v0 = vpop.f32.mrb[44].mxu0 }
 0x2f1   :  { %v1227_v1 = vmax.bf16 %v1226_v43, %v1202_v62  ;;  %v1038_v2 = vadd.f32 %v1037_v0, %v2678_v54  ;;  %v1039_v3 = vpop.f32.mrb[45].mxu0 }
 0x2f2   :  { %v1244_v4 = vmax.bf16 %v1243_v47, %v1203_v63  ;;  %v1040_v5 = vadd.f32 %v1039_v3, %v2682_v55  ;;  %v1041_v6 = vpop.f32.mrb[46].mxu0 }
 0x2f3   :  { %v1042_v7 = vadd.f32 %v1041_v6, %v2678_v54  ;;  %v1043_v8 = vpop.f32.mrb[47].mxu0  ;;  %v1154_v10 = vmax.f32 %v1038_v2, 0.0 }
 0x2f4   :  { %v1044_v9 = vadd.f32 %v1043_v8, %v2682_v55  ;;  %v1155_v12 = vmax.f32 %v1040_v5, 0.0 }
 0x2f5   :  { %v1156_v11 = vmax.f32 %v1042_v7, 0.0 }
 0x2f6   :  { %v1157_v13 = vmax.f32 %v1044_v9, 0.0 }
 0x2f7   :  { %v1204_v14 = vpack.c.bf16 %v1156_v11, %v1154_v10 }
 0x2f8   :  { %v1205_v15 = vpack.c.bf16 %v1157_v13, %v1155_v12  ;;  %v1047_v16 = vpop.f32.mrb[48].mxu0 }
 0x2f9   :  { %v2722_v18 = vmax.bf16 %v1227_v1, %v1204_v14  ;;  %v1048_v19 = vadd.f32 %v1047_v16, %v2678_v54  ;;  %v1049_v20 = vpop.f32.mrb[49].mxu0 }
 0x2fa   :  { %v2725_v21 = vmax.bf16 %v1244_v4, %v1205_v15  ;;  %v1050_v22 = vadd.f32 %v1049_v20, %v2682_v55  ;;  %v1051_v23 = vpop.f32.mrb[50].mxu0 }
 0x2fb   :  { %v1052_v24 = vadd.f32 %v1051_v23, %v2678_v54  ;;  %v1053_v25 = vpop.f32.mrb[51].mxu0  ;;  %v1158_v27 = vmax.f32 %v1048_v19, 0.0 }
 0x2fc   :  { %v1054_v26 = vadd.f32 %v1053_v25, %v2682_v55  ;;  %v1159_v29 = vmax.f32 %v1050_v22, 0.0 }
 0x2fd   :  { %v1160_v28 = vmax.f32 %v1052_v24, 0.0 }
 0x2fe   :  { %v1161_v30 = vmax.f32 %v1054_v26, 0.0 }
 0x2ff   :  { %v1206_v32 = vpack.c.bf16 %v1160_v28, %v1158_v27 }
 0x300   :  { %v1207_v17 = vpack.c.bf16 %v1161_v30, %v1159_v29  ;;  %v1057_v33 = vpop.f32.mrb[52].mxu0 }
 0x301   :  { %v1058_v34 = vadd.f32 %v1057_v33, %v2678_v54  ;;  %v1059_v35 = vpop.f32.mrb[53].mxu0 }
 0x302   :  { %v1060_v36 = vadd.f32 %v1059_v35, %v2682_v55  ;;  %v1061_v37 = vpop.f32.mrb[54].mxu0 }
 0x303   :  { %v1062_v38 = vadd.f32 %v1061_v37, %v2678_v54  ;;  %v1063_v39 = vpop.f32.mrb[55].mxu0  ;;  %v1162_v41 = vmax.f32 %v1058_v34, 0.0 }
 0x304   :  { %v1064_v40 = vadd.f32 %v1063_v39, %v2682_v55  ;;  %v1163_v42 = vmax.f32 %v1060_v36, 0.0 }
 0x305   :  { %v1164_v44 = vmax.f32 %v1062_v38, 0.0 }
 0x306   :  { %v1165_v53 = vmax.f32 %v1064_v40, 0.0 }
 0x307   :  { %v1208_v43 = vpack.c.bf16 %v1164_v44, %v1162_v41 }
 0x308   :  { %v1209_v31 = vpack.c.bf16 %v1165_v53, %v1163_v42  ;;  %v1067_v46 = vpop.f32.mrb[56].mxu0 }
 0x309   :  { %v1256_v47 = vmax.bf16 %v1208_v43, %v1206_v32  ;;  %v1068_v49 = vadd.f32 %v1067_v46, %v2678_v54  ;;  %v1069_v51 = vpop.f32.mrb[57].mxu0 }
 0x30a   :  { %v1273_v52 = vmax.bf16 %v1209_v31, %v1207_v17  ;;  %v1070_v56 = vadd.f32 %v1069_v51, %v2682_v55  ;;  %v1071_v57 = vpop.f32.mrb[58].mxu0 }
 0x30b   :  { %v1072_v58 = vadd.f32 %v1071_v57, %v2678_v54  ;;  %v1073_v59 = vpop.f32.mrb[59].mxu0  ;;  %v1166_v61 = vmax.f32 %v1068_v49, 0.0 }
 0x30c   :  { %v1074_v60 = vadd.f32 %v1073_v59, %v2682_v55  ;;  %v1167_v63 = vmax.f32 %v1070_v56, 0.0  ;;  %v1229_v59 = vunpack.i.l.bf16 %v2722_v18 }
 0x30d   :  { %v1168_v62 = vmax.f32 %v1072_v58, 0.0 }
 0x30e   :  { %v1169_v0 = vmax.f32 %v1074_v60, 0.0  ;;  %v1230_v60 = vunpack.i.h.bf16 %v2722_v18 }
 0x30f   :  { %v1210_v1 = vpack.c.bf16 %v1168_v62, %v1166_v61 }
 0x310   :  { %v1211_v2 = vpack.c.bf16 %v1169_v0, %v1167_v63  ;;  %v1077_v3 = vpop.f32.mrb[60].mxu0  ;;  %v1246_v0 = vunpack.i.l.bf16 %v2725_v21 }
 0x311   :  { %v1257_v4 = vmax.bf16 %v1256_v47, %v1210_v1  ;;  %v1078_v5 = vadd.f32 %v1077_v3, %v2678_v54  ;;  %v1079_v6 = vpop.f32.mrb[61].mxu0  ;;  %v1247_v1 = vunpack.i.h.bf16 %v2725_v21 }
 0x312   :  { %v1274_v7 = vmax.bf16 %v1273_v52, %v1211_v2  ;;  %v1080_v8 = vadd.f32 %v1079_v6, %v2682_v55  ;;  %v1081_v9 = vpop.f32.mrb[62].mxu0 }
 0x313   :  { %v1082_v10 = vadd.f32 %v1081_v9, %v2678_v54  ;;  %v1083_v11 = vpop.f32.mrb[63].mxu0  ;;  %v1170_v13 = vmax.f32 %v1078_v5, 0.0 }
 0x314   :  { %v1084_v12 = vadd.f32 %v1083_v11, %v2682_v55  ;;  %v1171_v15 = vmax.f32 %v1080_v8, 0.0  ;;  %v1231_v8 = vmax.f32 %v1229_v59, %v1230_v60 }
 0x315   :  { %v1172_v14 = vmax.f32 %v1082_v10, 0.0  ;;  %v1248_v10 = vmax.f32 %v1246_v0, %v1247_v1 }
 0x316   :  { %v1173_v16 = vmax.f32 %v1084_v12, 0.0 }
 0x317   :  { %v1212_v19 = vpack.c.bf16 %v1172_v14, %v1170_v13 }
 0x318   :  { %v1213_v20 = vpack.c.bf16 %v1173_v16, %v1171_v15  ;;  %v1087_v22 = vpop.f32.mrb[64].mxu0  ;;  %v1232_v16 = vrot.slane %v1231_v8, 4 }
 0x319   :  { %v1258_v23 = vmax.bf16 %v1257_v4, %v1212_v19  ;;  %v1088_v24 = vadd.f32 %v1087_v22, %v2678_v54  ;;  %v1089_v25 = vpop.f32.mrb[65].mxu0  ;;  %v1249_v22 = vrot.slane %v1248_v10, 4 }
 0x31a   :  { %v1275_v26 = vmax.bf16 %v1274_v7, %v1213_v20  ;;  %v1090_v27 = vadd.f32 %v1089_v25, %v2682_v55  ;;  %v1091_v28 = vpop.f32.mrb[66].mxu0 }
 0x31b   :  { %v1092_v29 = vadd.f32 %v1091_v28, %v2678_v54  ;;  %v1093_v30 = vpop.f32.mrb[67].mxu0  ;;  %v1174_v17 = vmax.f32 %v1088_v24, 0.0 }
 0x31c   :  { %v1094_v32 = vadd.f32 %v1093_v30, %v2682_v55  ;;  %v1175_v34 = vmax.f32 %v1090_v27, 0.0 }
 0x31d   :  { %v1176_v33 = vmax.f32 %v1092_v29, 0.0  ;;  %v1233_v29 = vmax.f32 %v1231_v8, %v1232_v16  ;;  %v2265_v16 = vld [vmem:[%s2847_s4 + $0x48] sm:$0xff]  }
 0x31e   :  { %v1177_v35 = vmax.f32 %v1094_v32, 0.0 }
 0x31f   :  { %v1214_v36 = vpack.c.bf16 %v1176_v33, %v1174_v17  ;;  %v1250_v17 = vmax.f32 %v1248_v10, %v1249_v22  ;;  %v2269_v22 = vld [vmem:[%s2847_s4 + $0x58] sm:$0xff]  }
 0x320   :  { %v1215_v37 = vpack.c.bf16 %v1177_v35, %v1175_v34  ;;  %v1097_v38 = vpop.f32.mrb[68].mxu0 }
 0x321   :  { %v1259_v39 = vmax.bf16 %v1258_v23, %v1214_v36  ;;  %v1098_v40 = vadd.f32 %v1097_v38, %v2678_v54  ;;  %v1099_v41 = vpop.f32.mrb[69].mxu0 }
 0x322   :  { %v1276_v44 = vmax.bf16 %v1275_v26, %v1215_v37  ;;  %v1100_v42 = vadd.f32 %v1099_v41, %v2682_v55  ;;  %v1101_v53 = vpop.f32.mrb[70].mxu0  ;;  %v1234_v37 = vrot.slane %v1233_v29, 2 }
 0x323   :  { %v1102_v43 = vadd.f32 %v1101_v53, %v2678_v54  ;;  %v1103_v31 = vpop.f32.mrb[71].mxu0  ;;  %v1178_v47 = vmax.f32 %v1098_v40, 0.0 }
 0x324   :  { %v1104_v46 = vadd.f32 %v1103_v31, %v2682_v55  ;;  %v1179_v51 = vmax.f32 %v1100_v42, 0.0 }
 0x325   :  { %v1180_v49 = vmax.f32 %v1102_v43, 0.0 }
 0x326   :  { %v1181_v52 = vmax.f32 %v1104_v46, 0.0 }
 0x327   :  { %v1216_v56 = vpack.c.bf16 %v1180_v49, %v1178_v47 }
 0x328   :  { %v1217_v57 = vpack.c.bf16 %v1181_v52, %v1179_v51  ;;  %v1107_v58 = vpop.f32.mrb[72].mxu0 }
 0x329   :  { %v1260_v61 = vmax.bf16 %v1259_v39, %v1216_v56  ;;  %v1108_v62 = vadd.f32 %v1107_v58, %v2678_v54  ;;  %v1109_v63 = vpop.f32.mrb[73].mxu0  ;;  %v1251_v39 = vrot.slane %v1250_v17, 2 }
 0x32a   :  { %v1277_v2 = vmax.bf16 %v1276_v44, %v1217_v57  ;;  %v1110_v3 = vadd.f32 %v1109_v63, %v2682_v55  ;;  %v1111_v4 = vpop.f32.mrb[74].mxu0 }
 0x32b   :  { %v1112_v5 = vadd.f32 %v1111_v4, %v2678_v54  ;;  %v1113_v6 = vpop.f32.mrb[75].mxu0  ;;  %v1182_v9 = vmax.f32 %v1108_v62, 0.0 }
 0x32c   :  { %v1114_v7 = vadd.f32 %v1113_v6, %v2682_v55  ;;  %v1183_v11 = vmax.f32 %v1110_v3, 0.0 }
 0x32d   :  { %v1184_v18 = vmax.f32 %v1112_v5, 0.0 }
 0x32e   :  { %v1185_v12 = vmax.f32 %v1114_v7, 0.0 }
 0x32f   :  { %v1218_v13 = vpack.c.bf16 %v1184_v18, %v1182_v9 }
 0x330   :  { %v1219_v14 = vpack.c.bf16 %v1185_v12, %v1183_v11  ;;  %v1117_v15 = vpop.f32.mrb[76].mxu0 }
 0x331   :  { %v1261_v21 = vmax.bf16 %v1260_v61, %v1218_v13  ;;  %v1118_v19 = vadd.f32 %v1117_v15, %v2678_v54  ;;  %v1119_v20 = vpop.f32.mrb[77].mxu0  ;;  %v2263_v13 = vld [vmem:[%s2847_s4 + $0x40] sm:$0xff]   ;;  %v2264_v15 = vld [vmem:[%s2847_s4 + $0x88] sm:$0xff]  }
 0x332   :  { %v1278_v23 = vmax.bf16 %v1277_v2, %v1219_v14  ;;  %v1120_v24 = vadd.f32 %v1119_v20, %v2682_v55  ;;  %v1121_v25 = vpop.f32.mrb[78].mxu0  ;;  %v2268_v20 = vld [vmem:[%s2847_s4 + $0x98] sm:$0xff]  }
 0x333   :  { %v1122_v26 = vadd.f32 %v1121_v25, %v2678_v54  ;;  %v1123_v27 = vpop.f32.mrb[79].mxu0  ;;  %v1186_v30 = vmax.f32 %v1118_v19, 0.0  ;;  %v1235_v54 = vmax.f32 %v1233_v29, %v1234_v37  ;;  %v2267_v19 = vld [vmem:[%s2847_s4 + $0x50] sm:$0xff]   ;;  %v2272_v25 = vld [vmem:[%s2847_s4 + $0xa8] sm:$0xff]   ;;  %v2276_v29 = vld [vmem:[%s2847_s4 + $0xb8] sm:$0xff]   ;;  %v1325_v37 = vsub.s32 3, %v2669_v45 }
 0x334   :  { %v1124_v28 = vadd.f32 %v1123_v27, %v2682_v55  ;;  %v1187_v33 = vmax.f32 %v1120_v24, 0.0  ;;  %v1252_v55 = vmax.f32 %v1250_v17, %v1251_v39  ;;  %v2271_v24 = vld [vmem:[%s2847_s4 + $0x60] sm:$0xff]   ;;  %v2274_v27 = vld [vmem:[%s2847_s4 + $0xb0] sm:$0xff]   ;;  %v1298_v17 = vsub.s32 2, %v2669_v45 }
 0x335   :  { %v1188_v32 = vmax.f32 %v1122_v26, 0.0  ;;  %v1236_v49 = vrot.slane %v1235_v54, 1  ;;  %v2273_v26 = vld [vmem:[%s2847_s4 + $0x68] sm:$0xff]  }
 0x336   :  { %v1189_v34 = vmax.f32 %v1124_v28, 0.0  ;;  %v1253_v56 = vrot.slane %v1252_v55, 1  ;;  %v2275_v28 = vld [vmem:[%s2847_s4 + $0x70] sm:$0xff]  }
 0x337   :  { %v1220_v35 = vpack.c.bf16 %v1188_v32, %v1186_v30  ;;  %v1237_v60 = vmax.f32 %v1235_v54, %v1236_v49  ;;  %v2277_v30 = vld [vmem:[%s2847_s4 + $0x78] sm:$0xff]   ;;  %v2357_v32 = vmov 0.0|0.0  }
 0x338   :  { %v1221_v36 = vpack.c.bf16 %v1189_v34, %v1187_v33  ;;  %v1254_v61 = vmax.f32 %v1252_v55, %v1253_v56  ;;  %v77_v33 = vld [vmem:[%s2846_s3] sm:$0x1c]  ;;  %v78_v34 = vld [vmem:[%s2846_s3 + $0x8] sm:$0x1c] }
 0x339   :  { %v1262_v38 = vmax.bf16 %v1261_v21, %v1220_v35  ;;  %v1238_v1 = vpack.i.bf16 %v1237_v60, %v1237_v60  ;;  %v2266_v21 = vld [vmem:[%s2847_s4 + $0x90] sm:$0xff]   ;;  %v1303_v39 = vrot.slane %v78_v34, %v1298_v17 }
 0x33a   :  { %v1279_v40 = vmax.bf16 %v1278_v23, %v1221_v36  ;;  %v1255_v3 = vpack.i.bf16 %v1254_v61, %v1254_v61  ;;  %v2270_v23 = vld [vmem:[%s2847_s4 + $0xa0] sm:$0xff]   ;;  %v1299_v36 = vrot.slane %v77_v33, %v1298_v17  ;;  %v2359_v17 = vmov 0.0  }
 0x33b   :  { %v1263_v41 = vunpack.i.l.bf16 %v1262_v38  ;;  %v1264_v44 = vunpack.i.h.bf16 %v1262_v38  ;;  %v1355_v7 = vunpack.c.l.b16 %v1238_v1  ;;  %v1803_v38 = vld [vmem:[%s2846_s3 + $0x1] ss:$8 sm:$0x3]  ;;  %s2360_s3 = smov [#allocation7]  }
 0x33c   :  { %v1280_v42 = vunpack.i.l.bf16 %v1279_v40  ;;  %v1281_v53 = vunpack.i.h.bf16 %v1279_v40  ;;  %v1356_v9 = vunpack.c.l.b16 %v1255_v3  ;;  %v1294_v35 = vpop.permute.xlu0 %1293  ;;  %v1314_v54 = vrot.slane %v1803_v38, %v849_v50  ;;  %v58_v3 = vld [vmem:[#allocation2 + $0x10] sm:$0xff]  ;;  %s1793_s10 = sshll.u32 %s2360_s3, 4  ;;  %s1794_s10 = int_to_ptr.vmem [resolvable:$true] %s1793_s10 }
 0x33d   :  { %v1265_v43 = vmax.f32 %v1263_v41, %v1264_v44  ;;  %v1304_v40 = vmul.f32 %v1299_v36, %v1294_v35  ;;  %v1310_v41 = vrot.slane %v1803_v38, %v845_v48  ;;  %v1326_v44 = vrot.slane %v77_v33, %v1325_v37  ;;  %s2322_s11 = scalar_lea.vmem %s1794_s10, 32  ;;  %p2327_p3 = scmp.lt.s32.totalorder %s1794_s10, %s1794_s10 }
 0x33e   :  { %v1282_v31 = vmax.f32 %v1280_v42, %v1281_v53  ;;  %v1341_v42 = vsub.s32 4, %v2669_v45  ;;  %v1305_v53 = vmul.f32 %v1303_v39, %v1294_v35  ;;  %p2323_p2 = scmp.ne.s32.totalorder %s1794_s10, %s2322_s11  ;;  %p2328_p4 = scmp.lt.s32.totalorder %s2322_s11, %s2322_s11 }
 0x33f   :  { %v1266_v46 = vrot.slane %v1265_v43, 4  ;;  %v1317_v55 = vadd.f32 %v1310_v41, %v1304_v40  ;;  %v1911_v41 = vld [vmem:[#allocation2 + $0xb] ss:$0 sm:$0xff] }
 0x340   :  { %v1283_v47 = vrot.slane %v1282_v31, 4  ;;  %v1318_v49 = vadd.f32 %v1314_v54, %v1305_v53  ;;  %v1346_v56 = vrot.slane %v78_v34, %v1341_v42  ;;  %p2329_p5 = por %p2328_p4, %p2327_p3 }
 0x341   :  { %v1267_v51 = vmax.f32 %v1265_v43, %v1266_v46 }
 0x342   :  { %v1284_v52 = vmax.f32 %v1282_v31, %v1283_v47  ;;  %v1330_v31 = vrot.slane %v78_v34, %v1325_v37  ;;  %v1342_v47 = vrot.slane %v77_v33, %v1341_v42  ;;  %v1894_v34 = vld [vmem:[#allocation2 + $0xa] ss:$0 sm:$0xff]  ;;  %p2330_p6 = pnand %p2329_p5, %p2323_p2 }
 0x343   :  { %v1268_v57 = vrot.slane %v1267_v51, 2  ;;  %v1321_v43 = vpop.permute.xlu0 %1320 }
 0x344   :  { %v1285_v58 = vrot.slane %v1284_v52, 2  ;;  %v1331_v46 = vmul.f32 %v1326_v44, %v1321_v43 }
 0x345   :  { %v1269_v59 = vmax.f32 %v1267_v51, %v1268_v57  ;;  %v1332_v51 = vmul.f32 %v1330_v31, %v1321_v43 }
 0x346   :  { %v1286_v62 = vmax.f32 %v1284_v52, %v1285_v58  ;;  %v1337_v52 = vpop.permute.xlu1 %1336  ;;  %v1333_v57 = vadd.f32 %v1331_v46, %v1317_v55 }
 0x347   :  { %v1270_v63 = vrot.slane %v1269_v59, 1  ;;  %v1347_v58 = vmul.f32 %v1342_v47, %v1337_v52  ;;  %v1348_v48 = vmul.f32 %v1346_v56, %v1337_v52 }
 0x348   :  { %v1287_v0 = vrot.slane %v1286_v62, 1 }
 0x349   :  { %v1271_v2 = vmax.f32 %v1269_v59, %v1270_v63  ;;  %v1334_v59 = vadd.f32 %v1332_v51, %v1318_v49  ;;  %v1349_v60 = vadd.f32 %v1347_v58, %v1333_v57 }
 0x34a   :  { %v1288_v4 = vmax.f32 %v1286_v62, %v1287_v0 }
 0x34b   :  { %v1272_v5 = vpack.i.bf16 %v1271_v2, %v1271_v2  ;;  %v1350_v62 = vadd.f32 %v1348_v48, %v1334_v59 }
 0x34c   :  { %v1289_v6 = vpack.i.bf16 %v1288_v4, %v1288_v4  ;;  %v59_v4 = vld [vmem:[#allocation2 + $0x18] sm:$0xff] }
 0x34d   :  { %v1357_v8 = vunpack.c.l.b16 %v1272_v5 }
 0x34e   :  { %v1358_v18 = vunpack.c.l.b16 %v1289_v6 }
 0x34f   :  { %v1360_v10 = vsel %vm1359_vm1, %v1357_v8, %v1355_v7  ;;  %v2142_v7 = vpack.c.bf16 %v59_v4, %v58_v3 }
 0x350   :  { %v1361_v11 = vsel %vm1359_vm1, %v1358_v18, %v1356_v9  ;;  %v1362_v14 = vpack.c.b16 %v1360_v10, %v1360_v10  ;;  %v60_v9 = vld [vmem:[#allocation2 + $0x20] sm:$0xff]  ;;  %v61_v18 = vld [vmem:[#allocation2 + $0x28] sm:$0xff] }
 0x351   :  { %v1363_v12 = vpack.c.b16 %v1361_v11, %v1361_v11  ;;  %v2145_v10 = vpack.c.bf16 %v61_v18, %v60_v9  ;;  %v62_v11 = vld [vmem:[#allocation2 + $0x30] sm:$0xff] }
 0x353   :  { %1558 = vmatprep.mubr.bf16.mxu1 %v1363_v12  ;;  %v63_v12 = vld [vmem:[#allocation2 + $0x38] sm:$0xff] }
 0x354   :  { %1559 = vmatmul.mubr.bf16.vlgmr.msra.gmra.mrb[48].mxu1 %v1362_v14  ;;  %v64_v14 = vld [vmem:[#allocation2 + $0x40] sm:$0xff] }
 0x355   :  { %1970 = vmatpush3.bf16.msra.mxu1 %v2263_v13  ;;  %v2148_v13 = vpack.c.bf16 %v63_v12, %v62_v11 }
 0x356   :  { %1971 = vmatprep.subr.bf16.mxu1 %v2264_v15  ;;  %v65_v15 = vld [vmem:[#allocation2 + $0x48] sm:$0xff] }
 0x359   :  { %1972 = vmatpush3.bf16.msra.mxu1 %v2265_v16  ;;  %v2151_v16 = vpack.c.bf16 %v65_v15, %v64_v14 }
 0x35a   :  { %1973 = vmatprep.subr.bf16.mxu1 %v2266_v21  ;;  %v66_v21 = vld [vmem:[#allocation2 + $0x50] sm:$0xff] }
 0x35d   :  { %1974 = vmatpush3.bf16.msra.mxu1 %v2267_v19  ;;  %v67_v19 = vld [vmem:[#allocation2 + $0x58] sm:$0xff] }
 0x35e   :  { %1975 = vmatprep.subr.bf16.mxu1 %v2268_v20  ;;  %v2154_v20 = vpack.c.bf16 %v67_v19, %v66_v21 }
 0x361   :  { %1976 = vmatpush3.bf16.msra.mxu1 %v2269_v22  ;;  %v68_v22 = vld [vmem:[#allocation2 + $0x60] sm:$0xff] }
 0x362   :  { %1977 = vmatprep.subr.bf16.mxu1 %v2270_v23  ;;  %v69_v23 = vld [vmem:[#allocation2 + $0x68] sm:$0xff] }
 0x365   :  { %1978 = vmatpush3.bf16.msra.mxu1 %v2271_v24  ;;  %v2157_v24 = vpack.c.bf16 %v69_v23, %v68_v22 }
 0x366   :  { %1979 = vmatprep.subr.bf16.mxu1 %v2272_v25  ;;  %v70_v25 = vld [vmem:[#allocation2 + $0x70] sm:$0xff] }
 0x369   :  { %1980 = vmatpush3.bf16.msra.mxu1 %v2273_v26  ;;  %v71_v26 = vld [vmem:[#allocation2 + $0x78] sm:$0xff] }
 0x36a   :  { %1981 = vmatprep.subr.bf16.mxu1 %v2274_v27  ;;  %v2160_v27 = vpack.c.bf16 %v71_v26, %v70_v25 }
 0x36d   :  { %1982 = vmatpush3.bf16.msra.mxu1 %v2275_v28  ;;  %v72_v28 = vld [vmem:[#allocation2 + $0x80] sm:$0xff] }
 0x36e   :  { %1983 = vmatprep.subr.bf16.mxu1 %v2276_v29  ;;  %v73_v29 = vld [vmem:[#allocation2 + $0x88] sm:$0xff] }
 0x371   :  { %1984 = vmatpush3.bf16.msra.mxu1 %v2277_v30  ;;  %v2163_v30 = vpack.c.bf16 %v73_v29, %v72_v28 }
 0x372   :  { %2141 = vmatprep.subr.bf16.mxu1 %v2357_v32 }
 0x427   :  { %v1560_v61 = vpop.f32.mrb[48].mxu1 }
 0x428   :  { %v1561_v63 = vadd.f32 %v1560_v61, %v1349_v60  ;;  %v1562_v0 = vpop.f32.mrb[49].mxu1 }
 0x429   :  { %v1563_v45 = vadd.f32 %v1562_v0, %v1350_v62  ;;  %v1564_v50 = vpop.f32.mrb[50].mxu1 }
 0x42a   :  { %v1567_v1 = vmax.f32 %v1561_v63, 0.0  ;;  %v1565_v2 = vpop.f32.mrb[51].mxu1 }
 0x42b   :  { %v1568_v5 = vmax.f32 %v1563_v45, 0.0 }
 0x42c   :  { %v1569_v8 = vpack.c.bf16 %v1567_v1, %v1567_v1 }
 0x42d   :  { %v1570_v6 = vpack.c.bf16 %v1568_v5, %v1568_v5 }
 0x42f   :  { %1703 = vmatprep.mubr.bf16.mxu1 %v1570_v6 }
 0x430   :  { %1704 = vmatmul.mubr.bf16.vlgmr.msra.gmra.mrb[52].mxu1 %v1569_v8 }
 0x431   :  { %2143 = vmatpush3.bf16.msra.mxu1 %v2142_v7  ;;  %2138 = vmatprep.mubr.msk.f32.mxu1 %vm2358_vm2, %v2359_v17 }
 0x432   :  { %2144 = vmatprep.subr.bf16.mxu1 %v2357_v32 }
 0x435   :  { %2146 = vmatpush3.bf16.msra.mxu1 %v2145_v10 }
 0x436   :  { %2147 = vmatprep.subr.bf16.mxu1 %v2357_v32 }
 0x439   :  { %2149 = vmatpush3.bf16.msra.mxu1 %v2148_v13 }
 0x43a   :  { %2150 = vmatprep.subr.bf16.mxu1 %v2357_v32 }
 0x43d   :  { %2152 = vmatpush3.bf16.msra.mxu1 %v2151_v16 }
 0x43e   :  { %2153 = vmatprep.subr.bf16.mxu1 %v2357_v32 }
 0x441   :  { %2155 = vmatpush3.bf16.msra.mxu1 %v2154_v20 }
 0x442   :  { %2156 = vmatprep.subr.bf16.mxu1 %v2357_v32 }
 0x445   :  { %2158 = vmatpush3.bf16.msra.mxu1 %v2157_v24 }
 0x446   :  { %2159 = vmatprep.subr.bf16.mxu1 %v2357_v32 }
 0x449   :  { %2161 = vmatpush3.bf16.msra.mxu1 %v2160_v27 }
 0x44a   :  { %2162 = vmatprep.subr.bf16.mxu1 %v2357_v32 }
 0x44d   :  { %2164 = vmatpush3.bf16.msra.mxu1 %v2163_v30 }
 0x503   :  { %v1985_v33 = vpop.f32.mrb[52].mxu1 }
 0x504   :  { %v1986_v35 = vpop.f32.mrb[53].mxu1 }
 0x505   :  { %v1987_v36 = vadd.f32 %v1986_v35, %v1985_v33  ;;  %v1988_v37 = vpop.f32.mrb[54].mxu1 }
 0x506   :  { %v1989_v38 = vpop.f32.mrb[55].mxu1 }
 0x507   :  { %v1706_v39 = vadd.f32 %v1987_v36, %v1894_v34 }
 0x509   :  { %v1711_v40 = vmax.f32 %v1706_v39, 0.0 }
 0x50b   :  { %2139 = vmatmul.mubr.f32.vlgmr.msra.gmra.mrb[56].mxu1 %v1711_v40 }
 0x5de   :  { %v1782_v32 = vpop.f32.mrb[56].mxu1 }
 0x5df   :  { %v1783_v44 = vadd.f32 %v1911_v41, %v1782_v32  ;;  %v2140_v42 = vpop.f32.mrb[57].mxu1 }
 0x5e1   :  { %1786 = vst [vmem:[#allocation7] sm:$0x3] %v1783_v44 }
 0x5e2   :  { %2333 = shalt.err (!%p2330_p6)
}
 0x5e3   :  { %s2334_s14 = scalar_lea.hbm %s2849_s6, 32 }
 0x5e4   :  { %p2335_p7 = scmp.ne.s32.totalorder %s2849_s6, %s2334_s14  ;;  %p2338_p8 = scmp.lt.u32.totalorder %s2334_s14, %s2849_s6 }
 0x5e6   :  { %p2340_p9 = pnand %p2338_p8, %p2335_p7 }
 0x5e8   :  { %2343 = shalt.err (!%p2340_p9)
}
 0x5e9   :  { %1796 = dma.vmem_to_hbm [thread:$0]  %s1794_s10, 32, %s2849_s6, [#allocation4]  }
 0x5ea   :  { %2348 = dma.done.wait [#allocation4], 32  }
 0x5eb   :  { %2349 = vsyncadd [#allocation4], 4294967264 }
 0x5ec   :  { %1800 = vsyncpa [#allocation3], 1 }
 0x5ed   :  { %1801 = vsyncpa [#allocation6], 1 }
 0x5ee   :  { %1802 = vsyncpa [#allocation4], 1 }

</bundles_post_ra>
